<compile_context>
chip_gen: v5e
topology: v5e:2x2
jax: 0.10.0
libtpu: 0.0.40
codegen_flags: <defaults>
</compile_context>

<pallas_src>
import functools

import jax
import jax.numpy as jnp
from jax.experimental import pallas as pl
from jax.experimental.pallas import tpu as pltpu

_F32 = jnp.float32
_BF16 = jnp.bfloat16


def _layernorm(z, w, b, eps=1e-5):
    mu = jnp.mean(z, axis=-1, keepdims=True)
    var = jnp.mean((z - mu) ** 2, axis=-1, keepdims=True)
    return (z - mu) * jax.lax.rsqrt(var + eps) * w + b


def _gelu_exact(x):
    # torch nn.GELU() default (exact, erf-based).  erf via Abramowitz-Stegun
    # 7.1.26 (|err| < 1.5e-7): only needs exp (EUP slot) + VPU mul/add, so it
    # lowers on every generation without an erf primitive.
    z = x * 0.7071067811865476
    a = jnp.abs(z)
    t = 1.0 / (1.0 + 0.3275911 * a)
    poly = t * (0.254829592 + t * (-0.284496736 + t * (1.421413741 +
               t * (-1.453152027 + t * 1.061405429))))
    erf_abs = 1.0 - poly * jnp.exp(-a * a)
    erf = jnp.where(z >= 0, erf_abs, -erf_abs)
    return 0.5 * x * (1.0 + erf)


def cross_attn_block_kernel(x_ref, key_ref, val_ref,
                            n1w_ref, n1b_ref,
                            wq_ref, bq_ref, wk_ref, bk_ref, wv_ref, bv_ref,
                            wo_ref, bo_ref,
                            n2w_ref, n2b_ref,
                            w1_ref, b1_ref, w2_ref, b2_ref,
                            *out_and_scratch, num_heads):
    if len(out_and_scratch) == 4:
        out_ref, attn_ref, kh_ref, vh_ref = out_and_scratch
    else:
        out_ref, kh_ref, vh_ref = out_and_scratch
        attn_ref = None

    nk = key_ref.shape[1]
    d_model = x_ref.shape[2]
    head_dim = d_model // num_heads

    # ---- K/V projection + head split: once per batch element (first q tile),
    #      cached head-major in bf16 VMEM scratch and reused by all q tiles.
    @pl.when(pl.program_id(1) == 0)
    def _project_kv():
        k = jnp.dot(key_ref[0], wk_ref[...], preferred_element_type=_F32) + bk_ref[...]
        v = jnp.dot(val_ref[0], wv_ref[...], preferred_element_type=_F32) + bv_ref[...]
        kh_ref[...] = jnp.transpose(
            k.reshape(nk, num_heads, head_dim), (1, 0, 2)).astype(_BF16)
        vh_ref[...] = jnp.transpose(
            v.reshape(nk, num_heads, head_dim), (1, 0, 2)).astype(_BF16)

    x = x_ref[0].astype(_F32)                         # (TQ, D) residual stream (f32)
    tq = x.shape[0]

    # ---- norm1 + Q projection (1/sqrt(head_dim) already folded into Wq/bq) ----
    q_n = _layernorm(x, n1w_ref[...], n1b_ref[...]).astype(_BF16)
    q = jnp.dot(q_n, wq_ref[...], preferred_element_type=_F32) + bq_ref[...]
    qh = jnp.transpose(q.reshape(tq, num_heads, head_dim), (1, 0, 2)).astype(_BF16)

    # ---- attention scores + softmax (heads = batch dim of the MXU matmul) ----
    # TODO(synk): for very long Nk, tile the KV axis with an online-softmax
    # (flash-style) inner loop to bound the (H, TQ, Nk) f32 working set.
    s = jnp.einsum('hqd,hkd->hqk', qh, kh_ref[...], preferred_element_type=_F32)
    s = s - jnp.max(s, axis=-1, keepdims=True)
    e = jnp.exp(s)
    denom = jnp.sum(e, axis=-1, keepdims=True)
    if attn_ref is not None:
        p = e / denom                                  # exact: returned weights sum to 1
        attn_ref[0] = (jnp.sum(p, axis=0) * (1.0 / num_heads)).astype(attn_ref.dtype)
    else:
        p = e * pl.reciprocal(denom, approx=True)      # EUP slot, ~free

    ao = jnp.einsum('hqk,hkd->hqd', p.astype(_BF16), vh_ref[...],
                    preferred_element_type=_F32)       # (H, TQ, head_dim)

    # ---- output projection: Wo pre-split per head (H, head_dim, D); batched
    #      per-head matmul + head-sum (no XLU relayout of ao) ----
    y = jnp.einsum('hqf,hfd->hqd', ao.astype(_BF16), wo_ref[...],
                   preferred_element_type=_F32)        # (H, TQ, D)
    y = jnp.sum(y, axis=0) + bo_ref[...]

    # ---- residual 1, norm2, MLP (fc1 -> exact GELU -> fc2), residual 2 ----
    x1 = x + y
    x1n = _layernorm(x1, n2w_ref[...], n2b_ref[...]).astype(_BF16)
    h1 = jnp.dot(x1n, w1_ref[...], preferred_element_type=_F32) + b1_ref[...]
    h1 = _gelu_exact(h1)
    mlp = jnp.dot(h1.astype(_BF16), w2_ref[...], preferred_element_type=_F32) + b2_ref[...]

    out_ref[0] = (x1 + mlp).astype(out_ref.dtype)
    # TODO(synk): training-mode Dropout / DropPath (stochastic) intentionally
    # omitted; kernel implements eval() semantics only.


def _pick_q_tile(nq, d, nk, hidden, num_heads, max_tile=128,
                 act_budget_bytes=12 << 20):
    """Budget-aware query tile. 128 default fills v5e's 128-wide MXU rows and
    halves f32 intermediates vs 256; the byte budget shrinks the tile further
    when the per-tile f32 working set would crowd VMEM (matters on v7x)."""
    def act_bytes(t):
        # residual/LN streams + MLP hidden + ~3 live copies of (H, t, Nk) scores
        return 4 * t * (6 * d + 2 * hidden + 3 * num_heads * nk)

    t = min(max_tile, nq)
    if t >= 8:
        t = (t // 8) * 8
    while t > 8 and act_bytes(t) > act_budget_bytes:
        t = max(8, ((t // 2) // 8) * 8)
    return nq if t >= nq else t


def _vmem_limit_bytes(d, hidden, nk, tq, num_heads):
    """Shape-derived VMEM budget, capped at 48 MiB (headroom on v7x's 64 MiB)."""
    head_dim = d // num_heads
    weights = 2 * (3 * d * d + num_heads * head_dim * d + 2 * d * hidden)   # bf16, 1-buffered
    kv_in = 2 * 2 * nk * d                                                  # bf16 key/value blocks
    kv_cache = 2 * 2 * num_heads * nk * max(head_dim, 128)                  # lane-padded scratch
    acts = 4 * tq * (6 * d + 2 * hidden + 3 * num_heads * nk)               # f32 intermediates
    io = 2 * 2 * 4 * tq * d                                                 # x + out, double-buffered
    total = int(1.5 * (weights + kv_in + kv_cache + acts + io)) + (4 << 20)
    return max(24 << 20, min(total, 48 << 20))


def cross_attention_block(x, key, value, params, num_heads, need_attn=False):
    B, Nq, D = x.shape
    Nk = key.shape[1]
    head_dim = D // num_heads
    hidden = params["w1"].shape[1]
    tq = _pick_q_tile(Nq, D, Nk, hidden, num_heads)
    n_q_tiles = pl.cdiv(Nq, tq)

    scale = 1.0 / float(head_dim) ** 0.5
    # One-time host-side weight prep: bf16, y = x @ W layout, 1/sqrt(head_dim)
    # folded into Wq/bq, Wo pre-split per head (H, head_dim, D).
    args = (
        x,
        key.astype(_BF16), value.astype(_BF16),
        params["n1w"].astype(_F32), params["n1b"].astype(_F32),
        (params["wq"] * scale).astype(_BF16), (params["bq"] * scale).astype(_F32),
        params["wk"].astype(_BF16), params["bk"].astype(_F32),
        params["wv"].astype(_BF16), params["bv"].astype(_F32),
        params["wo"].reshape(num_heads, head_dim, D).astype(_BF16),
        params["bo"].astype(_F32),
        params["n2w"].astype(_F32), params["n2b"].astype(_F32),
        params["w1"].astype(_BF16), params["b1"].astype(_F32),
        params["w2"].astype(_BF16), params["b2"].astype(_F32),
    )

    def inv_spec(shape):
        # grid-invariant operand: block index never changes -> single buffer.
        return pl.BlockSpec(shape, lambda b, q, _n=len(shape): (0,) * _n,
                            pipeline_mode=pl.Buffered(1))

    def kv_spec():
        # block index only changes with b: single buffer, one exposed fetch / batch.
        return pl.BlockSpec((1, Nk, D), lambda b, q: (b, 0, 0),
                            pipeline_mode=pl.Buffered(1))

    in_specs = [
        pl.BlockSpec((1, tq, D), lambda b, q: (b, q, 0)),        # x (query residual)
        kv_spec(), kv_spec(),                                    # key, value (bf16)
        inv_spec((1, D)), inv_spec((1, D)),                      # norm1 w, b
        inv_spec((D, D)), inv_spec((1, D)),                      # Wq, bq (pre-scaled)
        inv_spec((D, D)), inv_spec((1, D)),                      # Wk, bk
        inv_spec((D, D)), inv_spec((1, D)),                      # Wv, bv
        inv_spec((num_heads, head_dim, D)), inv_spec((1, D)),    # Wo (per-head), bo
        inv_spec((1, D)), inv_spec((1, D)),                      # norm2 w, b
        inv_spec((D, hidden)), inv_spec((1, hidden)),            # fc1 W, b
        inv_spec((hidden, D)), inv_spec((1, D)),                 # fc2 W, b
    ]

    out_specs = [pl.BlockSpec((1, tq, D), lambda b, q: (b, q, 0))]
    out_shape = [jax.ShapeDtypeStruct((B, Nq, D), x.dtype)]
    if need_attn:
        # bf16 write-back halves the (B, Nq, Nk) HBM traffic.
        out_specs.append(pl.BlockSpec((1, tq, Nk), lambda b, q: (b, q, 0)))
        out_shape.append(jax.ShapeDtypeStruct((B, Nq, Nk), _BF16))

    kernel = functools.partial(cross_attn_block_kernel, num_heads=num_heads)

    fn = pl.pallas_call(
        kernel,
        out_shape=tuple(out_shape),
        grid=(B, n_q_tiles),
        in_specs=in_specs,
        out_specs=tuple(out_specs),
        scratch_shapes=[
            pltpu.VMEM((num_heads, Nk, head_dim), _BF16),   # projected K (head-major)
            pltpu.VMEM((num_heads, Nk, head_dim), _BF16),   # projected V (head-major)
        ],
        compiler_params=pltpu.CompilerParams(
            # b parallel (v7x 2-TC sharding splits batches, keeping the per-b
            # KV scratch cache intact); q arbitrary (serial per b, so the
            # q == 0 cache fill is valid).
            dimension_semantics=("parallel", "arbitrary"),
            vmem_limit_bytes=_vmem_limit_bytes(D, hidden, Nk, tq, num_heads)),
    )

    result = fn(*args)
    if need_attn:
        out, attn = result
        return out, attn
    (out,) = result
    return out


def _reference(x, key, value, p, num_heads):
    """Pure-JAX f32 reference of the same forward pass (sanity check)."""
    def ln(z, w, b):
        mu = jnp.mean(z, axis=-1, keepdims=True)
        var = jnp.mean((z - mu) ** 2, axis=-1, keepdims=True)
        return (z - mu) / jnp.sqrt(var + 1e-5) * w + b

    B, Nq, D = x.shape
    Nk = key.shape[1]
    hd = D // num_heads
    q = ln(x, p["n1w"], p["n1b"]) @ p["wq"] + p["bq"]
    k = key @ p["wk"] + p["bk"]
    v = value @ p["wv"] + p["bv"]
    qh = q.reshape(B, Nq, num_heads, hd).transpose(0, 2, 1, 3) * (hd ** -0.5)
    kh = k.reshape(B, Nk, num_heads, hd).transpose(0, 2, 1, 3)
    vh = v.reshape(B, Nk, num_heads, hd).transpose(0, 2, 1, 3)
    s = jnp.einsum("bhqd,bhkd->bhqk", qh, kh)
    pw = jax.nn.softmax(s, axis=-1)
    ao = jnp.einsum("bhqk,bhkd->bhqd", pw, vh).transpose(0, 2, 1, 3).reshape(B, Nq, D)
    y = ao @ p["wo"] + p["bo"]
    x1 = x + y
    h = jax.nn.gelu(ln(x1, p["n2w"], p["n2b"]) @ p["w1"] + p["b1"], approximate=False)
    x2 = x1 + h @ p["w2"] + p["b2"]
    return x2, jnp.mean(pw, axis=1)


if __name__ == "__main__":
    B, Nq, Nk, D, H = 2, 8, 8, 32, 4
    mlp_ratio = 4.0
    hidden = int(D * mlp_ratio)

    root = jax.random.PRNGKey(0)
    ks = jax.random.split(root, 18)
    s = 0.05

    x = jax.random.normal(ks[0], (B, Nq, D), jnp.float32)
    key_in = jax.random.normal(ks[1], (B, Nk, D), jnp.float32)
    val_in = jax.random.normal(ks[2], (B, Nk, D), jnp.float32)

    # Projection weights stored pre-transposed (in_features, out_features) so
    # the kernel computes y = x @ W + b  (== PyTorch x @ W_torch.T + b).
    params = dict(
        n1w=1.0 + s * jax.random.normal(ks[15], (1, D), jnp.float32),
        n1b=s * jax.random.normal(ks[16], (1, D), jnp.float32),
        wq=s * jax.random.normal(ks[3], (D, D), jnp.float32),
        bq=s * jax.random.normal(ks[4], (1, D), jnp.float32),
        wk=s * jax.random.normal(ks[5], (D, D), jnp.float32),
        bk=s * jax.random.normal(ks[6], (1, D), jnp.float32),
        wv=s * jax.random.normal(ks[7], (D, D), jnp.float32),
        bv=s * jax.random.normal(ks[8], (1, D), jnp.float32),
        wo=s * jax.random.normal(ks[9], (D, D), jnp.float32),
        bo=s * jax.random.normal(ks[10], (1, D), jnp.float32),
        n2w=1.0 + s * jax.random.normal(ks[17], (1, D), jnp.float32),
        n2b=s * jax.random.normal(ks[14], (1, D), jnp.float32),
        w1=s * jax.random.normal(ks[11], (D, hidden), jnp.float32),
        b1=s * jax.random.normal(ks[12], (1, hidden), jnp.float32),
        w2=s * jax.random.normal(ks[13], (hidden, D), jnp.float32),
        b2=s * jax.random.normal(ks[14], (1, D), jnp.float32),
    )

    out, attn = cross_attention_block(x, key_in, val_in, params, num_heads=H,
                                      need_attn=True)
    out = jax.block_until_ready(out)
    attn = jax.block_until_ready(attn)

    ref_out, ref_attn = _reference(x, key_in, val_in, params, H)
    assert out.shape == (B, Nq, D) and attn.shape == (B, Nq, Nk)
    assert jnp.allclose(out, ref_out, rtol=5e-2, atol=5e-2)
    assert jnp.allclose(attn.astype(jnp.float32), ref_attn, rtol=5e-2, atol=5e-2)

    # Default path: attention weights not materialized (pure overhead when the
    # caller does not need them).
    out_noattn = cross_attention_block(x, key_in, val_in, params, num_heads=H)
    out_noattn = jax.block_until_ready(out_noattn)
    assert jnp.allclose(out_noattn, ref_out, rtol=5e-2, atol=5e-2)

    print("KERNEL_OK")
</pallas_src>

<mosaic_0001>
module attributes {stable_mosaic.version = 11 : i64} {
  func.func @cross_attn_block_kernel(%arg0: i32, %arg1: i32, %arg2: memref<1x8x32xf32, #tpu.memory_space<vmem>>, %arg3: memref<1x8x32xbf16, #tpu.memory_space<vmem>>, %arg4: memref<1x8x32xbf16, #tpu.memory_space<vmem>>, %arg5: memref<1x32xf32, #tpu.memory_space<vmem>>, %arg6: memref<1x32xf32, #tpu.memory_space<vmem>>, %arg7: memref<32x32xbf16, #tpu.memory_space<vmem>>, %arg8: memref<1x32xf32, #tpu.memory_space<vmem>>, %arg9: memref<32x32xbf16, #tpu.memory_space<vmem>>, %arg10: memref<1x32xf32, #tpu.memory_space<vmem>>, %arg11: memref<32x32xbf16, #tpu.memory_space<vmem>>, %arg12: memref<1x32xf32, #tpu.memory_space<vmem>>, %arg13: memref<4x8x32xbf16, #tpu.memory_space<vmem>>, %arg14: memref<1x32xf32, #tpu.memory_space<vmem>>, %arg15: memref<1x32xf32, #tpu.memory_space<vmem>>, %arg16: memref<1x32xf32, #tpu.memory_space<vmem>>, %arg17: memref<32x128xbf16, #tpu.memory_space<vmem>>, %arg18: memref<1x128xf32, #tpu.memory_space<vmem>>, %arg19: memref<128x32xbf16, #tpu.memory_space<vmem>>, %arg20: memref<1x32xf32, #tpu.memory_space<vmem>>, %arg21: memref<1x8x32xf32, #tpu.memory_space<vmem>>, %arg22: memref<1x8x8xbf16, #tpu.memory_space<vmem>>, %arg23: memref<4x8x8xbf16, #tpu.memory_space<vmem>>, %arg24: memref<4x8x8xbf16, #tpu.memory_space<vmem>>) attributes {dimension_semantics = [#tpu.dimension_semantics<parallel>, #tpu.dimension_semantics<arbitrary>], iteration_bounds = array<i64: 2, 1>, scalar_prefetch = 0 : i64, scratch_operands = 2 : i64, tpu.core_type = #tpu.core_type<tc>, window_params = [{transform_indices = @transform_0, window_bounds = array<i64: 1, 8, 32>}, {pipeline_mode = #tpu.pipeline_mode<synchronous>, transform_indices = @transform_1, window_bounds = array<i64: 1, 8, 32>}, {pipeline_mode = #tpu.pipeline_mode<synchronous>, transform_indices = @transform_2, window_bounds = array<i64: 1, 8, 32>}, {pipeline_mode = #tpu.pipeline_mode<synchronous>, transform_indices = @transform_3, window_bounds = array<i64: 1, 32>}, {pipeline_mode = #tpu.pipeline_mode<synchronous>, transform_indices = @transform_4, window_bounds = array<i64: 1, 32>}, {pipeline_mode = #tpu.pipeline_mode<synchronous>, transform_indices = @transform_5, window_bounds = array<i64: 32, 32>}, {pipeline_mode = #tpu.pipeline_mode<synchronous>, transform_indices = @transform_6, window_bounds = array<i64: 1, 32>}, {pipeline_mode = #tpu.pipeline_mode<synchronous>, transform_indices = @transform_7, window_bounds = array<i64: 32, 32>}, {pipeline_mode = #tpu.pipeline_mode<synchronous>, transform_indices = @transform_8, window_bounds = array<i64: 1, 32>}, {pipeline_mode = #tpu.pipeline_mode<synchronous>, transform_indices = @transform_9, window_bounds = array<i64: 32, 32>}, {pipeline_mode = #tpu.pipeline_mode<synchronous>, transform_indices = @transform_10, window_bounds = array<i64: 1, 32>}, {pipeline_mode = #tpu.pipeline_mode<synchronous>, transform_indices = @transform_11, window_bounds = array<i64: 4, 8, 32>}, {pipeline_mode = #tpu.pipeline_mode<synchronous>, transform_indices = @transform_12, window_bounds = array<i64: 1, 32>}, {pipeline_mode = #tpu.pipeline_mode<synchronous>, transform_indices = @transform_13, window_bounds = array<i64: 1, 32>}, {pipeline_mode = #tpu.pipeline_mode<synchronous>, transform_indices = @transform_14, window_bounds = array<i64: 1, 32>}, {pipeline_mode = #tpu.pipeline_mode<synchronous>, transform_indices = @transform_15, window_bounds = array<i64: 32, 128>}, {pipeline_mode = #tpu.pipeline_mode<synchronous>, transform_indices = @transform_16, window_bounds = array<i64: 1, 128>}, {pipeline_mode = #tpu.pipeline_mode<synchronous>, transform_indices = @transform_17, window_bounds = array<i64: 128, 32>}, {pipeline_mode = #tpu.pipeline_mode<synchronous>, transform_indices = @transform_18, window_bounds = array<i64: 1, 32>}, {transform_indices = @transform_19, window_bounds = array<i64: 1, 8, 32>}, {transform_indices = @transform_20, window_bounds = array<i64: 1, 8, 8>}]} {
    %c0_i32 = arith.constant 0 : i32
    %0 = arith.cmpi eq, %arg1, %c0_i32 : i32
    %1 = arith.extui %0 : i1 to i32
    %c0_i32_0 = arith.constant 0 : i32
    %2 = arith.cmpi ne, %1, %c0_i32_0 : i32
    scf.if %2 {
      %c0_75 = arith.constant 0 : index
      %c0_76 = arith.constant 0 : index
      %c0_77 = arith.constant 0 : index
      %147 = vector.load %arg3[%c0_75, %c0_76, %c0_77] : memref<1x8x32xbf16, #tpu.memory_space<vmem>>, vector<1x8x32xbf16>
      %148 = vector.shape_cast %147 : vector<1x8x32xbf16> to vector<8x32xbf16>
      %c0_78 = arith.constant 0 : index
      %c0_79 = arith.constant 0 : index
      %149 = vector.load %arg9[%c0_78, %c0_79] : memref<32x32xbf16, #tpu.memory_space<vmem>>, vector<32x32xbf16>
      %cst_80 = arith.constant dense<0.000000e+00> : vector<8x32xf32>
      %150 = tpu.matmul %148, %149, %cst_80 {dimension_numbers = #tpu.dot_dimension_numbers<[1], [0], [0], [1], [0, 0, 1, 1], [], []>} : vector<8x32xbf16>, vector<32x32xbf16>, vector<8x32xf32> -> vector<8x32xf32>
      %c0_81 = arith.constant 0 : index
      %c0_82 = arith.constant 0 : index
      %151 = vector.load %arg10[%c0_81, %c0_82] : memref<1x32xf32, #tpu.memory_space<vmem>>, vector<1x32xf32>
      %152 = vector.broadcast %151 : vector<1x32xf32> to vector<8x32xf32>
      %153 = arith.addf %150, %152 : vector<8x32xf32>
      %c0_83 = arith.constant 0 : index
      %c0_84 = arith.constant 0 : index
      %c0_85 = arith.constant 0 : index
      %154 = vector.load %arg4[%c0_83, %c0_84, %c0_85] : memref<1x8x32xbf16, #tpu.memory_space<vmem>>, vector<1x8x32xbf16>
      %155 = vector.shape_cast %154 : vector<1x8x32xbf16> to vector<8x32xbf16>
      %c0_86 = arith.constant 0 : index
      %c0_87 = arith.constant 0 : index
      %156 = vector.load %arg11[%c0_86, %c0_87] : memref<32x32xbf16, #tpu.memory_space<vmem>>, vector<32x32xbf16>
      %cst_88 = arith.constant dense<0.000000e+00> : vector<8x32xf32>
      %157 = tpu.matmul %155, %156, %cst_88 {dimension_numbers = #tpu.dot_dimension_numbers<[1], [0], [0], [1], [0, 0, 1, 1], [], []>} : vector<8x32xbf16>, vector<32x32xbf16>, vector<8x32xf32> -> vector<8x32xf32>
      %c0_89 = arith.constant 0 : index
      %c0_90 = arith.constant 0 : index
      %158 = vector.load %arg12[%c0_89, %c0_90] : memref<1x32xf32, #tpu.memory_space<vmem>>, vector<1x32xf32>
      %159 = vector.broadcast %158 : vector<1x32xf32> to vector<8x32xf32>
      %160 = arith.addf %157, %159 : vector<8x32xf32>
      %161 = vector.shape_cast %153 : vector<8x32xf32> to vector<8x4x8xf32>
      %162 = tpu.transpose %161, [1, 0, 2] : vector<8x4x8xf32> -> vector<4x8x8xf32>
      %163 = arith.truncf %162 : vector<4x8x8xf32> to vector<4x8x8xbf16>
      %c0_91 = arith.constant 0 : index
      %c0_92 = arith.constant 0 : index
      %c0_93 = arith.constant 0 : index
      %164 = vector.load %arg23[%c0_91, %c0_92, %c0_93] : memref<4x8x8xbf16, #tpu.memory_space<vmem>>, vector<4x8x8xbf16>
      tpu.vector_store %arg23[%c0_91, %c0_92, %c0_93], %163 {strides = array<i32>} : memref<4x8x8xbf16, #tpu.memory_space<vmem>>, vector<4x8x8xbf16>,
      %165 = vector.shape_cast %160 : vector<8x32xf32> to vector<8x4x8xf32>
      %166 = tpu.transpose %165, [1, 0, 2] : vector<8x4x8xf32> -> vector<4x8x8xf32>
      %167 = arith.truncf %166 : vector<4x8x8xf32> to vector<4x8x8xbf16>
      %c0_94 = arith.constant 0 : index
      %c0_95 = arith.constant 0 : index
      %c0_96 = arith.constant 0 : index
      %168 = vector.load %arg24[%c0_94, %c0_95, %c0_96] : memref<4x8x8xbf16, #tpu.memory_space<vmem>>, vector<4x8x8xbf16>
      tpu.vector_store %arg24[%c0_94, %c0_95, %c0_96], %167 {strides = array<i32>} : memref<4x8x8xbf16, #tpu.memory_space<vmem>>, vector<4x8x8xbf16>,
    } else {
    }
    %c0 = arith.constant 0 : index
    %c0_1 = arith.constant 0 : index
    %c0_2 = arith.constant 0 : index
    %3 = vector.load %arg2[%c0, %c0_1, %c0_2] : memref<1x8x32xf32, #tpu.memory_space<vmem>>, vector<1x8x32xf32>
    %4 = vector.shape_cast %3 : vector<1x8x32xf32> to vector<8x32xf32>
    %c0_3 = arith.constant 0 : index
    %c0_4 = arith.constant 0 : index
    %5 = vector.load %arg5[%c0_3, %c0_4] : memref<1x32xf32, #tpu.memory_space<vmem>>, vector<1x32xf32>
    %c0_5 = arith.constant 0 : index
    %c0_6 = arith.constant 0 : index
    %6 = vector.load %arg6[%c0_5, %c0_6] : memref<1x32xf32, #tpu.memory_space<vmem>>, vector<1x32xf32>
    %cst = arith.constant dense<0.000000e+00> : vector<8xf32>
    %7 = vector.multi_reduction <add>, %4, %cst [1] : vector<8x32xf32> to vector<8xf32>
    %8 = vector.shape_cast %7 : vector<8xf32> to vector<8x1xf32>
    %cst_7 = arith.constant 3.200000e+01 : f32
    %9 = vector.broadcast %cst_7 : f32 to vector<8x1xf32>
    %10 = arith.divf %8, %9 : vector<8x1xf32>
    %11 = vector.broadcast %10 : vector<8x1xf32> to vector<8x32xf32>
    %12 = arith.subf %4, %11 : vector<8x32xf32>
    %13 = arith.mulf %12, %12 : vector<8x32xf32>
    %cst_8 = arith.constant dense<0.000000e+00> : vector<8xf32>
    %14 = vector.multi_reduction <add>, %13, %cst_8 [1] : vector<8x32xf32> to vector<8xf32>
    %15 = vector.shape_cast %14 : vector<8xf32> to vector<8x1xf32>
    %cst_9 = arith.constant 3.200000e+01 : f32
    %16 = vector.broadcast %cst_9 : f32 to vector<8x1xf32>
    %17 = arith.divf %15, %16 : vector<8x1xf32>
    %18 = vector.broadcast %10 : vector<8x1xf32> to vector<8x32xf32>
    %19 = arith.subf %4, %18 : vector<8x32xf32>
    %cst_10 = arith.constant 9.99999974E-6 : f32
    %20 = vector.broadcast %cst_10 : f32 to vector<8x1xf32>
    %21 = arith.addf %17, %20 : vector<8x1xf32>
    %22 = math.rsqrt %21 : vector<8x1xf32>
    %23 = vector.broadcast %22 : vector<8x1xf32> to vector<8x32xf32>
    %24 = arith.mulf %19, %23 : vector<8x32xf32>
    %25 = vector.broadcast %5 : vector<1x32xf32> to vector<8x32xf32>
    %26 = arith.mulf %24, %25 : vector<8x32xf32>
    %27 = vector.broadcast %6 : vector<1x32xf32> to vector<8x32xf32>
    %28 = arith.addf %26, %27 : vector<8x32xf32>
    %29 = arith.truncf %28 : vector<8x32xf32> to vector<8x32xbf16>
    %c0_11 = arith.constant 0 : index
    %c0_12 = arith.constant 0 : index
    %30 = vector.load %arg7[%c0_11, %c0_12] : memref<32x32xbf16, #tpu.memory_space<vmem>>, vector<32x32xbf16>
    %cst_13 = arith.constant dense<0.000000e+00> : vector<8x32xf32>
    %31 = tpu.matmul %29, %30, %cst_13 {dimension_numbers = #tpu.dot_dimension_numbers<[1], [0], [0], [1], [0, 0, 1, 1], [], []>} : vector<8x32xbf16>, vector<32x32xbf16>, vector<8x32xf32> -> vector<8x32xf32>
    %c0_14 = arith.constant 0 : index
    %c0_15 = arith.constant 0 : index
    %32 = vector.load %arg8[%c0_14, %c0_15] : memref<1x32xf32, #tpu.memory_space<vmem>>, vector<1x32xf32>
    %33 = vector.broadcast %32 : vector<1x32xf32> to vector<8x32xf32>
    %34 = arith.addf %31, %33 : vector<8x32xf32>
    %35 = vector.shape_cast %34 : vector<8x32xf32> to vector<8x4x8xf32>
    %36 = tpu.transpose %35, [1, 0, 2] : vector<8x4x8xf32> -> vector<4x8x8xf32>
    %37 = arith.truncf %36 : vector<4x8x8xf32> to vector<4x8x8xbf16>
    %c0_16 = arith.constant 0 : index
    %c0_17 = arith.constant 0 : index
    %c0_18 = arith.constant 0 : index
    %38 = vector.load %arg23[%c0_16, %c0_17, %c0_18] : memref<4x8x8xbf16, #tpu.memory_space<vmem>>, vector<4x8x8xbf16>
    "tpu.trace_start"() <{level = 10 : i32, message = "hqd,hkd->hqk"}> : () -> ()
    %cst_19 = arith.constant dense<0.000000e+00> : vector<4x8x8xf32>
    %39 = tpu.matmul %37, %38, %cst_19 {dimension_numbers = #tpu.dot_dimension_numbers<[2], [2], [1], [1], [0, 0, 0, 1, 1, 1], [0], [0]>} : vector<4x8x8xbf16>, vector<4x8x8xbf16>, vector<4x8x8xf32> -> vector<4x8x8xf32>
    "tpu.trace_stop"() : () -> ()
    %cst_20 = arith.constant dense<0xFF800000> : vector<4x8xf32>
    %40 = vector.multi_reduction <maximumf>, %39, %cst_20 [2] : vector<4x8x8xf32> to vector<4x8xf32>
    %41 = vector.shape_cast %40 : vector<4x8xf32> to vector<4x8x1xf32>
    %42 = vector.broadcast %41 : vector<4x8x1xf32> to vector<4x8x8xf32>
    %43 = arith.subf %39, %42 : vector<4x8x8xf32>
    %44 = math.exp %43 : vector<4x8x8xf32>
    %cst_21 = arith.constant dense<0.000000e+00> : vector<4x8xf32>
    %45 = vector.multi_reduction <add>, %44, %cst_21 [2] : vector<4x8x8xf32> to vector<4x8xf32>
    %46 = vector.shape_cast %45 : vector<4x8xf32> to vector<4x8x1xf32>
    %47 = vector.broadcast %46 : vector<4x8x1xf32> to vector<4x8x8xf32>
    %48 = arith.divf %44, %47 : vector<4x8x8xf32>
    %cst_22 = arith.constant dense<0.000000e+00> : vector<8x8xf32>
    %49 = vector.multi_reduction <add>, %48, %cst_22 [0] : vector<4x8x8xf32> to vector<8x8xf32>
    %cst_23 = arith.constant 2.500000e-01 : f32
    %50 = vector.broadcast %cst_23 : f32 to vector<8x8xf32>
    %51 = arith.mulf %49, %50 : vector<8x8xf32>
    %52 = arith.truncf %51 : vector<8x8xf32> to vector<8x8xbf16>
    %c0_24 = arith.constant 0 : index
    %c0_25 = arith.constant 0 : index
    %c0_26 = arith.constant 0 : index
    %53 = vector.load %arg22[%c0_24, %c0_25, %c0_26] : memref<1x8x8xbf16, #tpu.memory_space<vmem>>, vector<1x8x8xbf16>
    %54 = vector.shape_cast %53 : vector<1x8x8xbf16> to vector<8x8xbf16>
    %55 = vector.shape_cast %52 : vector<8x8xbf16> to vector<1x8x8xbf16>
    tpu.vector_store %arg22[%c0_24, %c0_25, %c0_26], %55 {strides = array<i32>} : memref<1x8x8xbf16, #tpu.memory_space<vmem>>, vector<1x8x8xbf16>,
    %56 = arith.truncf %48 : vector<4x8x8xf32> to vector<4x8x8xbf16>
    %c0_27 = arith.constant 0 : index
    %c0_28 = arith.constant 0 : index
    %c0_29 = arith.constant 0 : index
    %57 = vector.load %arg24[%c0_27, %c0_28, %c0_29] : memref<4x8x8xbf16, #tpu.memory_space<vmem>>, vector<4x8x8xbf16>
    "tpu.trace_start"() <{level = 10 : i32, message = "hqk,hkd->hqd"}> : () -> ()
    %cst_30 = arith.constant dense<0.000000e+00> : vector<4x8x8xf32>
    %58 = tpu.matmul %56, %57, %cst_30 {dimension_numbers = #tpu.dot_dimension_numbers<[2], [1], [1], [2], [0, 0, 0, 1, 1, 2], [0], [0]>} : vector<4x8x8xbf16>, vector<4x8x8xbf16>, vector<4x8x8xf32> -> vector<4x8x8xf32>
    "tpu.trace_stop"() : () -> ()
    %59 = arith.truncf %58 : vector<4x8x8xf32> to vector<4x8x8xbf16>
    %c0_31 = arith.constant 0 : index
    %c0_32 = arith.constant 0 : index
    %c0_33 = arith.constant 0 : index
    %60 = vector.load %arg13[%c0_31, %c0_32, %c0_33] : memref<4x8x32xbf16, #tpu.memory_space<vmem>>, vector<4x8x32xbf16>
    "tpu.trace_start"() <{level = 10 : i32, message = "hqf,hfd->hqd"}> : () -> ()
    %cst_34 = arith.constant dense<0.000000e+00> : vector<4x8x32xf32>
    %61 = tpu.matmul %59, %60, %cst_34 {dimension_numbers = #tpu.dot_dimension_numbers<[2], [1], [1], [2], [0, 0, 0, 1, 1, 2], [0], [0]>} : vector<4x8x8xbf16>, vector<4x8x32xbf16>, vector<4x8x32xf32> -> vector<4x8x32xf32>
    "tpu.trace_stop"() : () -> ()
    %cst_35 = arith.constant dense<0.000000e+00> : vector<8x32xf32>
    %62 = vector.multi_reduction <add>, %61, %cst_35 [0] : vector<4x8x32xf32> to vector<8x32xf32>
    %c0_36 = arith.constant 0 : index
    %c0_37 = arith.constant 0 : index
    %63 = vector.load %arg14[%c0_36, %c0_37] : memref<1x32xf32, #tpu.memory_space<vmem>>, vector<1x32xf32>
    %64 = vector.broadcast %63 : vector<1x32xf32> to vector<8x32xf32>
    %65 = arith.addf %62, %64 : vector<8x32xf32>
    %66 = arith.addf %4, %65 : vector<8x32xf32>
    %c0_38 = arith.constant 0 : index
    %c0_39 = arith.constant 0 : index
    %67 = vector.load %arg15[%c0_38, %c0_39] : memref<1x32xf32, #tpu.memory_space<vmem>>, vector<1x32xf32>
    %c0_40 = arith.constant 0 : index
    %c0_41 = arith.constant 0 : index
    %68 = vector.load %arg16[%c0_40, %c0_41] : memref<1x32xf32, #tpu.memory_space<vmem>>, vector<1x32xf32>
    %cst_42 = arith.constant dense<0.000000e+00> : vector<8xf32>
    %69 = vector.multi_reduction <add>, %66, %cst_42 [1] : vector<8x32xf32> to vector<8xf32>
    %70 = vector.shape_cast %69 : vector<8xf32> to vector<8x1xf32>
    %cst_43 = arith.constant 3.200000e+01 : f32
    %71 = vector.broadcast %cst_43 : f32 to vector<8x1xf32>
    %72 = arith.divf %70, %71 : vector<8x1xf32>
    %73 = vector.broadcast %72 : vector<8x1xf32> to vector<8x32xf32>
    %74 = arith.subf %66, %73 : vector<8x32xf32>
    %75 = arith.mulf %74, %74 : vector<8x32xf32>
    %cst_44 = arith.constant dense<0.000000e+00> : vector<8xf32>
    %76 = vector.multi_reduction <add>, %75, %cst_44 [1] : vector<8x32xf32> to vector<8xf32>
    %77 = vector.shape_cast %76 : vector<8xf32> to vector<8x1xf32>
    %cst_45 = arith.constant 3.200000e+01 : f32
    %78 = vector.broadcast %cst_45 : f32 to vector<8x1xf32>
    %79 = arith.divf %77, %78 : vector<8x1xf32>
    %80 = vector.broadcast %72 : vector<8x1xf32> to vector<8x32xf32>
    %81 = arith.subf %66, %80 : vector<8x32xf32>
    %cst_46 = arith.constant 9.99999974E-6 : f32
    %82 = vector.broadcast %cst_46 : f32 to vector<8x1xf32>
    %83 = arith.addf %79, %82 : vector<8x1xf32>
    %84 = math.rsqrt %83 : vector<8x1xf32>
    %85 = vector.broadcast %84 : vector<8x1xf32> to vector<8x32xf32>
    %86 = arith.mulf %81, %85 : vector<8x32xf32>
    %87 = vector.broadcast %67 : vector<1x32xf32> to vector<8x32xf32>
    %88 = arith.mulf %86, %87 : vector<8x32xf32>
    %89 = vector.broadcast %68 : vector<1x32xf32> to vector<8x32xf32>
    %90 = arith.addf %88, %89 : vector<8x32xf32>
    %91 = arith.truncf %90 : vector<8x32xf32> to vector<8x32xbf16>
    %c0_47 = arith.constant 0 : index
    %c0_48 = arith.constant 0 : index
    %92 = vector.load %arg17[%c0_47, %c0_48] : memref<32x128xbf16, #tpu.memory_space<vmem>>, vector<32x128xbf16>
    %cst_49 = arith.constant dense<0.000000e+00> : vector<8x128xf32>
    %93 = tpu.matmul %91, %92, %cst_49 {dimension_numbers = #tpu.dot_dimension_numbers<[1], [0], [0], [1], [0, 0, 1, 1], [], []>} : vector<8x32xbf16>, vector<32x128xbf16>, vector<8x128xf32> -> vector<8x128xf32>
    %c0_50 = arith.constant 0 : index
    %c0_51 = arith.constant 0 : index
    %94 = vector.load %arg18[%c0_50, %c0_51] : memref<1x128xf32, #tpu.memory_space<vmem>>, vector<1x128xf32>
    %95 = vector.broadcast %94 : vector<1x128xf32> to vector<8x128xf32>
    %96 = arith.addf %93, %95 : vector<8x128xf32>
    %cst_52 = arith.constant 0.707106769 : f32
    %97 = vector.broadcast %cst_52 : f32 to vector<8x128xf32>
    %98 = arith.mulf %96, %97 : vector<8x128xf32>
    %99 = math.absf %98 : vector<8x128xf32>
    %cst_53 = arith.constant 0.327591091 : f32
    %100 = vector.broadcast %cst_53 : f32 to vector<8x128xf32>
    %101 = arith.mulf %100, %99 : vector<8x128xf32>
    %cst_54 = arith.constant 1.000000e+00 : f32
    %102 = vector.broadcast %cst_54 : f32 to vector<8x128xf32>
    %103 = arith.addf %102, %101 : vector<8x128xf32>
    %cst_55 = arith.constant 1.000000e+00 : f32
    %104 = vector.broadcast %cst_55 : f32 to vector<8x128xf32>
    %105 = arith.divf %104, %103 : vector<8x128xf32>
    %cst_56 = arith.constant 1.06140542 : f32
    %106 = vector.broadcast %cst_56 : f32 to vector<8x128xf32>
    %107 = arith.mulf %105, %106 : vector<8x128xf32>
    %cst_57 = arith.constant -1.45315206 : f32
    %108 = vector.broadcast %cst_57 : f32 to vector<8x128xf32>
    %109 = arith.addf %108, %107 : vector<8x128xf32>
    %110 = arith.mulf %105, %109 : vector<8x128xf32>
    %cst_58 = arith.constant 1.42141378 : f32
    %111 = vector.broadcast %cst_58 : f32 to vector<8x128xf32>
    %112 = arith.addf %111, %110 : vector<8x128xf32>
    %113 = arith.mulf %105, %112 : vector<8x128xf32>
    %cst_59 = arith.constant -0.284496725 : f32
    %114 = vector.broadcast %cst_59 : f32 to vector<8x128xf32>
    %115 = arith.addf %114, %113 : vector<8x128xf32>
    %116 = arith.mulf %105, %115 : vector<8x128xf32>
    %cst_60 = arith.constant 0.254829586 : f32
    %117 = vector.broadcast %cst_60 : f32 to vector<8x128xf32>
    %118 = arith.addf %117, %116 : vector<8x128xf32>
    %119 = arith.mulf %105, %118 : vector<8x128xf32>
    %cst_61 = arith.constant 0.000000e+00 : f32
    %120 = vector.broadcast %cst_61 : f32 to vector<8x128xf32>
    %121 = arith.subf %120, %99 : vector<8x128xf32>
    %122 = arith.mulf %121, %99 : vector<8x128xf32>
    %123 = math.exp %122 : vector<8x128xf32>
    %124 = arith.mulf %119, %123 : vector<8x128xf32>
    %cst_62 = arith.constant 1.000000e+00 : f32
    %125 = vector.broadcast %cst_62 : f32 to vector<8x128xf32>
    %126 = arith.subf %125, %124 : vector<8x128xf32>
    %cst_63 = arith.constant 0.000000e+00 : f32
    %127 = vector.broadcast %cst_63 : f32 to vector<8x128xf32>
    %128 = arith.cmpf oge, %98, %127 : vector<8x128xf32>
    %cst_64 = arith.constant 0.000000e+00 : f32
    %129 = vector.broadcast %cst_64 : f32 to vector<8x128xf32>
    %130 = arith.subf %129, %126 : vector<8x128xf32>
    %131 = arith.select %128, %126, %130 : vector<8x128xi1>, vector<8x128xf32>
    %cst_65 = arith.constant 5.000000e-01 : f32
    %132 = vector.broadcast %cst_65 : f32 to vector<8x128xf32>
    %133 = arith.mulf %132, %96 : vector<8x128xf32>
    %cst_66 = arith.constant 1.000000e+00 : f32
    %134 = vector.broadcast %cst_66 : f32 to vector<8x128xf32>
    %135 = arith.addf %134, %131 : vector<8x128xf32>
    %136 = arith.mulf %133, %135 : vector<8x128xf32>
    %137 = arith.truncf %136 : vector<8x128xf32> to vector<8x128xbf16>
    %c0_67 = arith.constant 0 : index
    %c0_68 = arith.constant 0 : index
    %138 = vector.load %arg19[%c0_67, %c0_68] : memref<128x32xbf16, #tpu.memory_space<vmem>>, vector<128x32xbf16>
    %cst_69 = arith.constant dense<0.000000e+00> : vector<8x32xf32>
    %139 = tpu.matmul %137, %138, %cst_69 {dimension_numbers = #tpu.dot_dimension_numbers<[1], [0], [0], [1], [0, 0, 1, 1], [], []>} : vector<8x128xbf16>, vector<128x32xbf16>, vector<8x32xf32> -> vector<8x32xf32>
    %c0_70 = arith.constant 0 : index
    %c0_71 = arith.constant 0 : index
    %140 = vector.load %arg20[%c0_70, %c0_71] : memref<1x32xf32, #tpu.memory_space<vmem>>, vector<1x32xf32>
    %141 = vector.broadcast %140 : vector<1x32xf32> to vector<8x32xf32>
    %142 = arith.addf %139, %141 : vector<8x32xf32>
    %143 = arith.addf %66, %142 : vector<8x32xf32>
    %c0_72 = arith.constant 0 : index
    %c0_73 = arith.constant 0 : index
    %c0_74 = arith.constant 0 : index
    %144 = vector.load %arg21[%c0_72, %c0_73, %c0_74] : memref<1x8x32xf32, #tpu.memory_space<vmem>>, vector<1x8x32xf32>
    %145 = vector.shape_cast %144 : vector<1x8x32xf32> to vector<8x32xf32>
    %146 = vector.shape_cast %143 : vector<8x32xf32> to vector<1x8x32xf32>
    tpu.vector_store %arg21[%c0_72, %c0_73, %c0_74], %146 {strides = array<i32>} : memref<1x8x32xf32, #tpu.memory_space<vmem>>, vector<1x8x32xf32>,
    return
  }
  func.func @transform_0(%arg0: i32, %arg1: i32) -> (i32, i32, i32) {
    %c0_i32 = arith.constant 0 : i32
    %c0_i32_0 = arith.constant 0 : i32
    return %arg0, %arg1, %c0_i32 : i32, i32, i32
  }
  func.func @transform_1(%arg0: i32, %arg1: i32) -> (i32, i32, i32) {
    %c0_i32 = arith.constant 0 : i32
    %c0_i32_0 = arith.constant 0 : i32
    %c0_i32_1 = arith.constant 0 : i32
    return %arg0, %c0_i32, %c0_i32_0 : i32, i32, i32
  }
  func.func @transform_2(%arg0: i32, %arg1: i32) -> (i32, i32, i32) {
    %c0_i32 = arith.constant 0 : i32
    %c0_i32_0 = arith.constant 0 : i32
    %c0_i32_1 = arith.constant 0 : i32
    return %arg0, %c0_i32, %c0_i32_0 : i32, i32, i32
  }
  func.func @transform_3(%arg0: i32, %arg1: i32) -> (i32, i32) {
    %c0_i32 = arith.constant 0 : i32
    %c0_i32_0 = arith.constant 0 : i32
    %c0_i32_1 = arith.constant 0 : i32
    return %c0_i32, %c0_i32_0 : i32, i32
  }
  func.func @transform_4(%arg0: i32, %arg1: i32) -> (i32, i32) {
    %c0_i32 = arith.constant 0 : i32
    %c0_i32_0 = arith.constant 0 : i32
    %c0_i32_1 = arith.constant 0 : i32
    return %c0_i32, %c0_i32_0 : i32, i32
  }
  func.func @transform_5(%arg0: i32, %arg1: i32) -> (i32, i32) {
    %c0_i32 = arith.constant 0 : i32
    %c0_i32_0 = arith.constant 0 : i32
    %c0_i32_1 = arith.constant 0 : i32
    return %c0_i32, %c0_i32_0 : i32, i32
  }
  func.func @transform_6(%arg0: i32, %arg1: i32) -> (i32, i32) {
    %c0_i32 = arith.constant 0 : i32
    %c0_i32_0 = arith.constant 0 : i32
    %c0_i32_1 = arith.constant 0 : i32
    return %c0_i32, %c0_i32_0 : i32, i32
  }
  func.func @transform_7(%arg0: i32, %arg1: i32) -> (i32, i32) {
    %c0_i32 = arith.constant 0 : i32
    %c0_i32_0 = arith.constant 0 : i32
    %c0_i32_1 = arith.constant 0 : i32
    return %c0_i32, %c0_i32_0 : i32, i32
  }
  func.func @transform_8(%arg0: i32, %arg1: i32) -> (i32, i32) {
    %c0_i32 = arith.constant 0 : i32
    %c0_i32_0 = arith.constant 0 : i32
    %c0_i32_1 = arith.constant 0 : i32
    return %c0_i32, %c0_i32_0 : i32, i32
  }
  func.func @transform_9(%arg0: i32, %arg1: i32) -> (i32, i32) {
    %c0_i32 = arith.constant 0 : i32
    %c0_i32_0 = arith.constant 0 : i32
    %c0_i32_1 = arith.constant 0 : i32
    return %c0_i32, %c0_i32_0 : i32, i32
  }
  func.func @transform_10(%arg0: i32, %arg1: i32) -> (i32, i32) {
    %c0_i32 = arith.constant 0 : i32
    %c0_i32_0 = arith.constant 0 : i32
    %c0_i32_1 = arith.constant 0 : i32
    return %c0_i32, %c0_i32_0 : i32, i32
  }
  func.func @transform_11(%arg0: i32, %arg1: i32) -> (i32, i32, i32) {
    %c0_i32 = arith.constant 0 : i32
    %c0_i32_0 = arith.constant 0 : i32
    %c0_i32_1 = arith.constant 0 : i32
    %c0_i32_2 = arith.constant 0 : i32
    return %c0_i32, %c0_i32_0, %c0_i32_1 : i32, i32, i32
  }
  func.func @transform_12(%arg0: i32, %arg1: i32) -> (i32, i32) {
    %c0_i32 = arith.constant 0 : i32
    %c0_i32_0 = arith.constant 0 : i32
    %c0_i32_1 = arith.constant 0 : i32
    return %c0_i32, %c0_i32_0 : i32, i32
  }
  func.func @transform_13(%arg0: i32, %arg1: i32) -> (i32, i32) {
    %c0_i32 = arith.constant 0 : i32
    %c0_i32_0 = arith.constant 0 : i32
    %c0_i32_1 = arith.constant 0 : i32
    return %c0_i32, %c0_i32_0 : i32, i32
  }
  func.func @transform_14(%arg0: i32, %arg1: i32) -> (i32, i32) {
    %c0_i32 = arith.constant 0 : i32
    %c0_i32_0 = arith.constant 0 : i32
    %c0_i32_1 = arith.constant 0 : i32
    return %c0_i32, %c0_i32_0 : i32, i32
  }
  func.func @transform_15(%arg0: i32, %arg1: i32) -> (i32, i32) {
    %c0_i32 = arith.constant 0 : i32
    %c0_i32_0 = arith.constant 0 : i32
    %c0_i32_1 = arith.constant 0 : i32
    return %c0_i32, %c0_i32_0 : i32, i32
  }
  func.func @transform_16(%arg0: i32, %arg1: i32) -> (i32, i32) {
    %c0_i32 = arith.constant 0 : i32
    %c0_i32_0 = arith.constant 0 : i32
    %c0_i32_1 = arith.constant 0 : i32
    return %c0_i32, %c0_i32_0 : i32, i32
  }
  func.func @transform_17(%arg0: i32, %arg1: i32) -> (i32, i32) {
    %c0_i32 = arith.constant 0 : i32
    %c0_i32_0 = arith.constant 0 : i32
    %c0_i32_1 = arith.constant 0 : i32
    return %c0_i32, %c0_i32_0 : i32, i32
  }
  func.func @transform_18(%arg0: i32, %arg1: i32) -> (i32, i32) {
    %c0_i32 = arith.constant 0 : i32
    %c0_i32_0 = arith.constant 0 : i32
    %c0_i32_1 = arith.constant 0 : i32
    return %c0_i32, %c0_i32_0 : i32, i32
  }
  func.func @transform_19(%arg0: i32, %arg1: i32) -> (i32, i32, i32) {
    %c0_i32 = arith.constant 0 : i32
    %c0_i32_0 = arith.constant 0 : i32
    return %arg0, %arg1, %c0_i32 : i32, i32, i32
  }
  func.func @transform_20(%arg0: i32, %arg1: i32) -> (i32, i32, i32) {
    %c0_i32 = arith.constant 0 : i32
    %c0_i32_0 = arith.constant 0 : i32
    return %arg0, %arg1, %c0_i32 : i32, i32, i32
  }
}

</mosaic_0001>

<bundles_post_ra>
// kernel: tpu_custom_call.1
= control target key start
LH: loop header
LB: loop body
LE: loop exit
PB: predicated region body
PF: predicated region fallthrough
CT: control target
= control target key end

     0   :  { %s3747_s0 = inlined_call_operand.vmem [shape: f32[2,8,32], index: 0, kind: input, shape index: {}]   ;;  %s3748_s1 = inlined_call_operand.hbm [shape: bf16[2,8,32], index: 1, kind: input, shape index: {}]   ;;  %s3749_s2 = inlined_call_operand.hbm [shape: bf16[2,8,32], index: 2, kind: input, shape index: {}]   ;;  %s3750_s3 = inlined_call_operand.hbm [shape: f32[1,32], index: 3, kind: input, shape index: {}]   ;;  %s3751_s4 = inlined_call_operand.hbm [shape: f32[1,32], index: 4, kind: input, shape index: {}]   ;;  %s3752_s5 = inlined_call_operand.vmem [shape: bf16[32,32], index: 5, kind: input, shape index: {}]   ;;  %s3753_s6 = inlined_call_operand.hbm [shape: f32[1,32], index: 6, kind: input, shape index: {}]   ;;  %s3754_s7 = inlined_call_operand.vmem [shape: bf16[32,32], index: 7, kind: input, shape index: {}]   ;;  %s3755_s8 = inlined_call_operand.hbm [shape: f32[1,32], index: 8, kind: input, shape index: {}]   ;;  %s3756_s9 = inlined_call_operand.vmem [shape: bf16[32,32], index: 9, kind: input, shape index: {}]   ;;  %s3757_s10 = inlined_call_operand.hbm [shape: f32[1,32], index: 10, kind: input, shape index: {}]   ;;  %s3758_s11 = inlined_call_operand.vmem [shape: bf16[4,8,32], index: 11, kind: input, shape index: {}]   ;;  %s3759_s12 = inlined_call_operand.hbm [shape: f32[1,32], index: 12, kind: input, shape index: {}]   ;;  %s3760_s13 = inlined_call_operand.hbm [shape: f32[1,32], index: 13, kind: input, shape index: {}]   ;;  %s3761_s14 = inlined_call_operand.hbm [shape: f32[1,32], index: 14, kind: input, shape index: {}]   ;;  %s3762_s15 = inlined_call_operand.hbm [shape: bf16[32,128], index: 15, kind: input, shape index: {}]   ;;  %s3763_s16 = inlined_call_operand.hbm [shape: f32[1,128], index: 16, kind: input, shape index: {}]   ;;  %s3764_s17 = inlined_call_operand.vmem [shape: bf16[128,32], index: 17, kind: input, shape index: {}]   ;;  %s3765_s18 = inlined_call_operand.vmem [shape: f32[1,32], index: 18, kind: input, shape index: {}]   ;;  %s3766_s19 = inlined_call_operand.hbm [shape: f32[2,8,32], index: 19, kind: output, shape index: {0}]   ;;  %s3767_s20 = inlined_call_operand.hbm [shape: bf16[2,8,8], index: 20, kind: output, shape index: {1}]  }
   0x1   :  { %3788 = sst [smem:[#allocation46_spill]] %s3747_s0 }
   0x2   :  { %3789 = sst [smem:[#allocation47_spill]] %s3748_s1 }
   0x3   :  { %3790 = sst [smem:[#allocation48_spill]] %s3749_s2 }
   0x4   :  { %3791 = sst [smem:[#allocation49_spill]] %s3750_s3 }
   0x5   :  { %3792 = sst [smem:[#allocation50_spill]] %s3751_s4 }
   0x6   :  { %3793 = sst [smem:[#allocation51_spill]] %s3752_s5 }
   0x7   :  { %3794 = sst [smem:[#allocation52_spill]] %s3755_s8 }
   0x8   :  { %3795 = sst [smem:[#allocation53_spill]] %s3756_s9 }
   0x9   :  { %3796 = sst [smem:[#allocation54_spill]] %s3758_s11 }
   0xa   :  { %3797 = sst [smem:[#allocation55_spill]] %s3759_s12 }
   0xb   :  { %3798 = sst [smem:[#allocation56_spill]] %s3764_s17 }
   0xc   :  { %3799 = sst [smem:[#allocation57_spill]] %s3765_s18 }
   0xd   :  { %3800 = sst [smem:[#allocation58_spill]] %s3766_s19 }
   0xe   :  { %3801 = sst [smem:[#allocation59_spill]] %s3767_s20 }
   0xf   :  { %26 = vsyncpa [#allocation5], 0 }
  0x10   :  { %27 = vsyncpa [#allocation8], 0 }
  0x11   :  { %28 = vsyncpa [#allocation11], 0 }
  0x12   :  { %29 = vsyncpa [#allocation14], 0 }
  0x13   :  { %30 = vsyncpa [#allocation17], 0 }
  0x14   :  { %31 = vsyncpa [#allocation20], 0 }
  0x15   :  { %32 = vsyncpa [#allocation23], 0 }
  0x16   :  { %33 = vsyncpa [#allocation6], 0 }
  0x17   :  { %35 = vsyncpa [#allocation6 + $0x1], 0 }
  0x18   :  { %36 = vsyncpa [#allocation26], 0 }
  0x19   :  { %38 = vsyncpa [#allocation26 + $0x1], 0  ;;  %s3200_s1 = smov 0   ;;  %s3202_s22 = smov 0  }
  0x1a   :  { %s3204_s23 = smov 0   ;;  %s3206_s24 = smov 0  }
  0x1b   :  { %s3208_s2 = smov 0   ;;  %s3210_s25 = smov 0  }
  0x1c LB: > { %3802 = sst [smem:[#allocation37_spill]] %s3053_s1  ;;  %s2221_s3 = sadd.s32 4294967295, %s3073_s25   ;;  %s3073_s25 = sphi %s3210_s25, %s44_s25   ;;  %s3069_s2 = sphi %s3208_s2, %s3845_s2   ;;  %s3065_s24 = sphi %s3206_s24, %s3844_s24   ;;  %s3061_s23 = sphi %s3204_s23, %s3843_s23   ;;  %s3057_s22 = sphi %s3202_s22, %s3842_s22   ;;  %s3053_s1 = sphi %s3200_s1, %s3841_s1  }
  0x1d   : > { %3803 = sst [smem:[#allocation38_spill]] %s3057_s22  ;;  %s2222_s26 = sadd.s32 4294967294, %s3073_s25  }
  0x1e   : > { %3804 = sst [smem:[#allocation39_spill]] %s3061_s23  ;;  %s56_s27 = sadd.s32 1, %s3069_s2 }
  0x1f   : > { %3805 = sst [smem:[#allocation40_spill]] %s3069_s2  ;;  %s91_s28 = sadd.s32 1, %s3061_s23 }
  0x20   : > { %3806 = sst [smem:[#allocation41_spill]] %s3073_s25  ;;  %p58_p0 = scmp.ge.s32.totalorder %s56_s27, 2 }
  0x21   : > { %p104_p1 = scmp.ne.s32.totalorder %s3057_s22, %s3053_s1  ;;  %p3236_p2 = scmp.eq.s32.totalorder %s2221_s3, 0 }
  0x22   : > { %p491_p3 = scmp.ne.s32.totalorder %s3061_s23, %s3057_s22  ;;  %s3847_s27 = smov (%p58_p0, %s56_s27), 0 }
  0x23   : > { %3808 = sst [smem:[#allocation42_spill]] %s3847_s27  ;;  %p3246_p4 = por %p3236_p2, %p104_p1 }
  0x24   : > { %p492_p5 = scmp.eq.s32.totalorder %s2221_s3, 1  ;;  %s88_s30 = ssub.s32 %s3069_s2, %s3847_s27 }
  0x25   : > { %p498_p6 = scmp.eq.s32.totalorder %s2222_s26, 1  ;;  %p89_p7 = scmp.eq.s32.totalorder %s88_s30, 0 }
  0x26   : > { %p3252_p8 = por %p492_p5, %p491_p3  ;;  %p2223_p10 = scmp.ge.s32.totalorder %s3073_s25, 1 }
  0x27   : > { %p3256_p9 = por %p498_p6, %p104_p1  ;;  %p533_p11 = scmp.lt.s32.totalorder %s3073_s25, 3 }
  0x28   : > { %s3810_s0 = scalar_select %p3252_p8, 1, 0 }
  0x29   : > { %s3812_s21 = scalar_select %p3256_p9, 1, 0 }
  0x2a   : > { %3811 = sst [smem:[#allocation43_spill]] %s3810_s0  ;;  %s3266_s19 = sshll.u32 %s3065_s24, 2 }
  0x2b   : > { %3813 = sst [smem:[#allocation44_spill]] %s3812_s21  ;;  %p3272_p12 = pnand %p2223_p10, %p533_p11 }
  0x2c   : > { %s3262_s1 = scalar_select %p89_p7, %s3061_s23, %s91_s28  }
  0x2d   : > { %s3815_s30 = sld [smem:[#allocation48_spill]]  ;;  %s3075_s20 = smov [#allocation7]  }
  0x2e   : > { %3814 = sst [smem:[#allocation45_spill]] %s3262_s1  ;;  %s563_s21 = sshll.u32 %s3075_s20, 4  ;;  %s564_s21 = int_to_ptr.vmem [resolvable:$true] %s563_s21 }
  0x2f   : > { %p2401_p13 = pneg %p3272_p12  ;;  %s3817_s23 = sld [smem:[#allocation50_spill]] }
  0x31   : > { %p3283_p0 = pnand %p2401_p13, %p3246_p4  ;;  %p3289_p1 = pnand %p2401_p13, %p3236_p2 }
  0x33   : > { %s559_s27 = scalar_lea.hbm %s3815_s30, %s3266_s19  ;;  %p2575_p5 = pneg %p3283_p0 }
  0x34   : > { %s561_s18 = sshll.u32 %s559_s27, 4  ;;  %s2578_s28 = scalar_lea.hbm %s3815_s30, 8  ;;  %s562_s18 = int_to_ptr.hbm [resolvable:$true] %s561_s18 }
  0x35   : > { %s585_s25 = sshll.u32 %s3817_s23, 4  ;;  %s2571_s20 = sshra.s32 %s562_s18, 4  ;;  %s586_s25 = int_to_ptr.hbm [resolvable:$true] %s585_s25  ;;  %s2572_s20 = int_to_ptr.hbm [resolvable:$true] %s2571_s20 }
  0x36   : > { %s2573_s26 = scalar_lea.hbm %s2572_s20, 4  ;;  %p2579_p10 = scmp.lt.s32.totalorder %s2572_s20, %s3815_s30 }
  0x37   : > { %p2574_p3 = scmp.ne.s32.totalorder %s2572_s20, %s2573_s26  ;;  %p2580_p11 = scmp.lt.s32.totalorder %s2578_s28, %s2573_s26 }
  0x39   : > { %p2576_p6 = pnand %p2575_p5, %p2574_p3  ;;  %p2581_p13 = por %p2580_p11, %p2579_p10 }
  0x3b   : > { %p2577_p7 = pneg %p2576_p6 }
  0x3d   : > { %p2582_p9 = pnand %p2581_p13, %p2577_p7 }
  0x3f   : > { %2585 = shalt.err (!%p2582_p9)
}
  0x40   : > { %2407 = dma.hbm_to_vmem [thread:$0]  (!%p3283_p0), %s562_s18, 64, %s564_s21, [#allocation8]  }
  0x41   : > { %s3076_s22 = smov [#allocation10]   ;;  %s3820_s8 = sld [smem:[#allocation52_spill]] }
  0x42   : > { %s587_s11 = sshll.u32 %s3076_s22, 4  ;;  %s3821_s12 = sld [smem:[#allocation55_spill]]  ;;  %s588_s11 = int_to_ptr.vmem [resolvable:$true] %s587_s11 }
  0x43   : > { %2413 = dma.hbm_to_vmem [thread:$0]  (!%p3289_p1), %s586_s25, 16, %s588_s11, [#allocation11]  }
  0x44   : > { %s3077_s26 = smov [#allocation13]   ;;  %s3078_s18 = smov [#allocation16]  }
  0x45   : > { %s617_s23 = sshll.u32 %s3077_s26, 4  ;;  %s647_s5 = sshll.u32 %s3078_s18, 4  ;;  %s618_s23 = int_to_ptr.vmem [resolvable:$true] %s617_s23  ;;  %s648_s5 = int_to_ptr.vmem [resolvable:$true] %s647_s5 }
  0x46   : > { %s669_s21 = sshll.u32 %s3761_s14, 4  ;;  %s3822_s28 = sld [smem:[#allocation47_spill]]  ;;  %s670_s21 = int_to_ptr.hbm [resolvable:$true] %s669_s21 }
  0x47   : > { %s615_s1 = sshll.u32 %s3820_s8, 4  ;;  %s3079_s0 = smov [#allocation19]   ;;  %s616_s1 = int_to_ptr.hbm [resolvable:$true] %s615_s1 }
  0x48   : > { %s645_s20 = sshll.u32 %s3821_s12, 4  ;;  %s671_s26 = sshll.u32 %s3079_s0, 4  ;;  %s646_s20 = int_to_ptr.hbm [resolvable:$true] %s645_s20  ;;  %s672_s26 = int_to_ptr.vmem [resolvable:$true] %s671_s26 }
  0x49   : > { %2419 = dma.hbm_to_vmem [thread:$0]  (!%p3289_p1), %s616_s1, 16, %s618_s23, [#allocation14]  }
  0x4a   : > { %2425 = dma.hbm_to_vmem [thread:$0]  (!%p3289_p1), %s646_s20, 16, %s648_s5, [#allocation17]  }
  0x4b   : > { %2431 = dma.hbm_to_vmem [thread:$0]  (!%p3289_p1), %s670_s21, 16, %s672_s26, [#allocation20]  }
  0x4c   : > { %s545_s17 = scalar_lea.hbm %s3822_s28, %s3266_s19  ;;  %s3823_s18 = sld [smem:[#allocation49_spill]] }
  0x4d   : > { %s547_s8 = sshll.u32 %s545_s17, 4  ;;  %s3080_s22 = smov [#allocation4]   ;;  %s548_s8 = int_to_ptr.hbm [resolvable:$true] %s547_s8 }
  0x4e   : > { %s549_s12 = sshll.u32 %s3080_s22, 4  ;;  %s2721_s20 = sshra.s32 %s548_s8, 4  ;;  %s550_s12 = int_to_ptr.vmem [resolvable:$true] %s549_s12  ;;  %s2722_s20 = int_to_ptr.hbm [resolvable:$true] %s2721_s20 }
  0x4f   : > { %s2723_s5 = scalar_lea.hbm %s2722_s20, 4  ;;  %s2728_s21 = scalar_lea.hbm %s3822_s28, 8 }
  0x50   : > { %p2724_p9 = scmp.ne.s32.totalorder %s2722_s20, %s2723_s5  ;;  %p2729_p7 = scmp.lt.s32.totalorder %s2722_s20, %s3822_s28 }
  0x51   : > { %p2730_p10 = scmp.lt.s32.totalorder %s2728_s21, %s2723_s5 }
  0x52   : > { %s573_s9 = sshll.u32 %s3823_s18, 4  ;;  %p2726_p3 = pnand %p2724_p9, %p2575_p5  ;;  %s574_s9 = int_to_ptr.hbm [resolvable:$true] %s573_s9 }
  0x53   : > { %p2731_p11 = por %p2730_p10, %p2729_p7 }
  0x54   : > { %p2727_p6 = pneg %p2726_p3 }
  0x56   : > { %p2732_p13 = pnand %p2731_p11, %p2727_p6 }
  0x58   : > { %2735 = shalt.err (!%p2732_p13)
}
  0x59   : > { %2404 = dma.hbm_to_vmem [thread:$0]  (!%p3283_p0), %s548_s8, 64, %s550_s12, [#allocation5]  }
  0x5a   : > { %s3081_s26 = smov [#allocation9]   ;;  %s600_s22 = sshll.u32 %s3753_s6, 4  ;;  %s601_s22 = int_to_ptr.hbm [resolvable:$true] %s600_s22 }
  0x5b   : > { %s575_s1 = sshll.u32 %s3081_s26, 4  ;;  %s630_s11 = sshll.u32 %s3757_s10, 4  ;;  %s576_s1 = int_to_ptr.vmem [resolvable:$true] %s575_s1  ;;  %s631_s11 = int_to_ptr.hbm [resolvable:$true] %s630_s11 }
  0x5c   : > { %2410 = dma.hbm_to_vmem [thread:$0]  (!%p3289_p1), %s574_s9, 16, %s576_s1, [#allocation8]  }
  0x5d   : > { %s3082_s25 = smov [#allocation12]   ;;  %s3083_s8 = smov [#allocation15]  }
  0x5e   : > { %s602_s3 = sshll.u32 %s3082_s25, 4  ;;  %s632_s12 = sshll.u32 %s3083_s8, 4  ;;  %s603_s3 = int_to_ptr.vmem [resolvable:$true] %s602_s3  ;;  %s633_s12 = int_to_ptr.vmem [resolvable:$true] %s632_s12 }
  0x5f   : > { %2416 = dma.hbm_to_vmem [thread:$0]  (!%p3289_p1), %s601_s22, 16, %s603_s3, [#allocation11]  }
  0x60   : > { %s657_s0 = sshll.u32 %s3760_s13, 4  ;;  %s680_s1 = sshll.u32 %s3762_s15, 4  ;;  %s658_s0 = int_to_ptr.hbm [resolvable:$true] %s657_s0  ;;  %s681_s1 = int_to_ptr.hbm [resolvable:$true] %s680_s1 }
  0x61   : > { %2422 = dma.hbm_to_vmem [thread:$0]  (!%p3289_p1), %s631_s11, 16, %s633_s12, [#allocation14]  }
  0x62   : > { %s3084_s23 = smov [#allocation18]   ;;  %s3085_s22 = smov [#allocation21]  }
  0x63   : > { %s659_s18 = sshll.u32 %s3084_s23, 4  ;;  %s682_s20 = sshll.u32 %s3085_s22, 4  ;;  %s660_s18 = int_to_ptr.vmem [resolvable:$true] %s659_s18  ;;  %s683_s20 = int_to_ptr.vmem [resolvable:$true] %s682_s20 }
  0x64   : > { %2428 = dma.hbm_to_vmem [thread:$0]  (!%p3289_p1), %s658_s0, 16, %s660_s18, [#allocation17]  }
  0x65   : > { %s3086_s5 = smov 64   ;;  %s3087_s25 = smov 4  }
  0x66   : > { %2434 = dma.hbm_to_vmem [thread:$0]  (!%p3289_p1), %s681_s1, 256, %s683_s20, [#allocation20], %s3086_s5, %s3086_s5, %s3087_s25  }
  0x67   : > { %s695_s8 = sshll.u32 %s3763_s16, 4  ;;  %s3088_s12 = smov [#allocation22]   ;;  %s696_s8 = int_to_ptr.hbm [resolvable:$true] %s695_s8 }
  0x68   : > { %s697_s21 = sshll.u32 %s3088_s12, 4  ;;  %726 = sbr.rel (%p3272_p12) target bundleno = 1946 (0x79a), region = 96  ;;  %s698_s21 = int_to_ptr.vmem [resolvable:$true] %s697_s21 }
  0x69   : > { %2437 = dma.hbm_to_vmem [thread:$0]  (!%p3289_p1), %s696_s8, 16, %s698_s21, [#allocation23]  }
  0x6d   : > { %3012 = dma.done.wait (%p3246_p4), [#allocation5], 64  }
  0x6e   : > { %3014 = vsyncadd (%p3246_p4), [#allocation5], 4294967232 }
  0x6f   : > { %3016 = dma.done.wait (%p3246_p4), [#allocation8], 64  }
  0x70   : > { %3018 = vsyncadd (%p3246_p4), [#allocation8], 4294967232 }
  0x71   : > { %3020 = dma.done.wait (%p3236_p2), [#allocation8], 16  }
  0x72   : > { %3022 = vsyncadd (%p3236_p2), [#allocation8], 4294967280 }
  0x73   : > { %3024 = dma.done.wait (%p3236_p2), [#allocation11], 32  }
  0x74   : > { %3026 = vsyncadd (%p3236_p2), [#allocation11], 4294967264 }
  0x75   : > { %3028 = dma.done.wait (%p3236_p2), [#allocation14], 32  }
  0x76   : > { %3030 = vsyncadd (%p3236_p2), [#allocation14], 4294967264 }
  0x77   : > { %3032 = dma.done.wait (%p3236_p2), [#allocation17], 32  }
  0x78   : > { %3034 = vsyncadd (%p3236_p2), [#allocation17], 4294967264 }
  0x79   : > { %3036 = dma.done.wait (%p3236_p2), [#allocation20], 272  }
  0x7a   : > { %3038 = vsyncadd (%p3236_p2), [#allocation20], 4294967024 }
  0x7b   : > { %3040 = dma.done.wait (%p3236_p2), [#allocation23], 16  }
  0x7c   : > { %3042 = vsyncadd (%p3236_p2), [#allocation23], 4294967280  ;;  %p847_p4 = scmp.lt.s32.totalorder %s3065_s24, 1  ;;  %s3824_s0 = sld [smem:[#allocation46_spill]]  ;;  %vm880_vm0 = vcmask 261120   ;;  %v2338_v1 = vld [vmem:[%s3754_s7 + $0x8] sm:$0xff] }
  0x7d   : > { %v2337_v3 = vld [vmem:[%s3754_s7] sm:$0xff]  ;;  %890 = vmatpush.bf16.msra.mxu1 %v2338_v1  ;;  %v3089_v5 = vmov 32.0   ;;  %v2534_v17 = vld [vmem:[#allocation13] ss:$0 sm:$0xff]  ;;  %s3090_s18 = smov 120   ;;  %s3091_s22 = smov 104  }
  0x7e   : > { %s848_s2 = scalar_select %p847_p4, %s3065_s24, 1  ;;  %v859_v4 = vld [vmem:[#allocation4] sm:$0xf]  ;;  %2544 = vrcp.f32 %v3089_v5  ;;  %v3093_v27 = vmov 1983009808   ;;  %vm945_vm2 = vcmask 1047556  }
  0x7f   : > { %s3092_s20 = smov 112   ;;  %s3825_s3 = sld [smem:[#allocation51_spill]]  ;;  %v950_v28 = vunpack.c.l.s4 %v3093_v27  ;;  %v3094_v44 = vmov 1934713408   ;;  %v2535_v51 = vld [vmem:[#allocation9] ss:$0 sm:$0xff] }
  0x80   : > { %s2250_s29 = sshll.u32 %s848_s2, 3  ;;  %s3826_s2 = sld [smem:[#allocation53_spill]]  ;;  %v974_v45 = vunpack.c.l.s4 %v3094_v44  ;;  %v2536_v58 = vld [vmem:[#allocation10] ss:$0 sm:$0xff]  ;;  %vm1059_vm6 = vcmask 60416   ;;  %vm1399_vm7 = vcmask 64512  }
  0x81   : > { %891 = vmatpush.bf16.msra.mxu1 %v2337_v3  ;;  %v3432_v34 = vunpack.c.0.s8 %v950_v28  ;;  %vm1594_vm8 = vcmask 1043456   ;;  %s3828_s1 = sld [smem:[#allocation54_spill]] }
  0x82   : > { %s3407_s9 = scalar_lea.vmem %s3824_s0, %s2250_s29  ;;  %v3444_v56 = vunpack.c.0.s8 %v974_v45  ;;  %s3830_s23 = sld [smem:[#allocation38_spill]] }
  0x83   : > { %v1192_v0 = vld [vmem:[%s3407_s9] sm:$0xff]  ;;  %s3831_s27 = sld [smem:[#allocation56_spill]] }
  0x84   : > { %v1196_v2 = vsel %vm880_vm0, %v1192_v0, 0.0  ;;  %2259 = vmatmul.msk.bf16.vlgmr.msra.gmra.mxu1 %vm880_vm0, %v859_v4  ;;  %v2545_v6 = vpop.eup %2544 }
  0x85   : > { %1197 = vadd.xlane.f32.xlu0 %v1196_v2  ;;  %v1200_v7 = vmul.f32 32.0, %v2545_v6  ;;  %vm1204_vm1 = vweird.f32 %v2545_v6  ;;  %v2342_v21 = vld [vmem:[%s3825_s3 + $0x8] sm:$0xff]  ;;  %v2341_v22 = vld [vmem:[%s3825_s3] sm:$0xff] }
  0x86   : > { %1263 = vmatpush.bf16.msra.mxu2 %v2342_v21  ;;  %s3827_s29 = smov %s3826_s2  ;;  %v2340_v41 = vld [vmem:[%s3826_s2 + $0x8] sm:$0xff] }
  0x87   : > { %v1201_v8 = vsub.f32 1.0, %v1200_v7  ;;  %927 = vmatpush.bf16.msrb.mxu1 %v2340_v41  ;;  %v2339_v62 = vld [vmem:[%s3827_s29] sm:$0xff]  ;;  %s3829_s4 = smov %s3828_s1 }
  0x89   : > { %v1202_v9 = vmul.f32 %v2545_v6, %v1201_v8 }
  0x8a   : > { %1264 = vmatpush.bf16.msra.mxu2 %v2341_v22 }
  0x8b   : > { %v1203_v10 = vadd.f32 %v2545_v6, %v1202_v9  ;;  %928 = vmatpush.bf16.msrb.mxu1 %v2339_v62 }
  0x8d   : > { %v3418_v11 = vsel %vm1204_vm1, %v2545_v6, %v1203_v10 }
  0xf8   : > { %v1198_v12 = vpop.xlane.xlu0 %1197 }
  0xf9   : > { %v1206_v13 = vmul.f32 %v3418_v11, %v1198_v12 }
  0xfb   : > { %v1207_v14 = vsub.f32 %v1192_v0, %v1206_v13 }
  0xfd   : > { %v1208_v15 = vmul.f32 %v1207_v14, %v1207_v14 }
  0xff   : > { %v1209_v16 = vsel %vm880_vm0, %v1208_v15, 0.0 }
 0x100   : > { %1210 = vadd.xlane.f32.xlu0 %v1209_v16 }
 0x101   : > { %v893_v18 = vpop.f32.mrf.mxu1 }
 0x102   : > { %v894_v19 = vadd.f32 %v2534_v17, %v893_v18 }
 0x104   : > { %935 = vrot.lane.b32.xlu1 %v894_v19, %s3090_s18  ;;  %941 = vrot.lane.b32.xlu2 %v894_v19, %s3091_s22  ;;  %v947_v40 = vrot.slane %v894_v19, 4 }
 0x109   : > { %v895_v20 = vpop.f32.mrf.mxu1 }
 0x10c   : > { %938 = vrot.lane.b32.xlu1 %v894_v19, %s3092_s20 }
 0x15e   : > { %v942_v26 = vpop.permute.xlu2 %941 }
 0x15f   : > { %v957_v29 = vrot.slane %v942_v26, 4 }
 0x173   : > { %v1211_v23 = vpop.xlane.xlu0 %1210 }
 0x174   : > { %v1212_v24 = vmul.f32 %v1211_v23, %v3418_v11 }
 0x176   : > { %v1213_v25 = vadd.f32 1e-05, %v1212_v24  ;;  %v936_v31 = vpop.permute.xlu1 %935 }
 0x177   : > { %v959_v33 = vrot.slane %v936_v31, 4  ;;  %v958_v36 = vsel %vm945_vm2, %v957_v29, %v936_v31 }
 0x178   : > { %2546 = vrsqrt.f32 %v1213_v25  ;;  %v964_v42 = vperm.slane %v958_v36, %v3432_v34  ;;  %vm1220_vm4 = vweird.f32 %v1213_v25 }
 0x179   : > { %v960_v37 = vsel %vm945_vm2, %v942_v26, %v959_v33 }
 0x17a   : > { %v968_v38 = vperm.slane %v960_v37, %v3432_v34  ;;  %v969_v53 = vrot.slane %v964_v42, 4 }
 0x17c   : > { %v981_v47 = vrot.slane %v968_v38, 4 }
 0x17e   : > { %v2547_v30 = vpop.eup %2546  ;;  %v939_v46 = vpop.permute.xlu1 %938 }
 0x17f   : > { %v1215_v32 = vmul.f32 %v2547_v30, %v1213_v25  ;;  %vm1221_vm3 = vweird.f32 %v2547_v30  ;;  %v944_v49 = vrot.slane %v939_v46, 4  ;;  %v948_v50 = vsel %vm945_vm2, %v939_v46, %v947_v40 }
 0x180   : > { %vm1222_vm5 = vmor %vm1220_vm4, %vm1221_vm3  ;;  %v956_v52 = vperm.slane %v948_v50, %v3432_v34 }
 0x181   : > { %v1216_v35 = vmul.f32 %v2547_v30, %v1215_v32  ;;  %v946_v55 = vsel %vm945_vm2, %v944_v49, %v894_v19 }
 0x182   : > { %v952_v59 = vperm.slane %v946_v55, %v3432_v34  ;;  %v983_v60 = vrot.slane %v956_v52, 4  ;;  %v982_v61 = vsel %vm945_vm2, %v981_v47, %v956_v52 }
 0x183   : > { %v1217_v39 = vmul.f32 0.5, %v1216_v35  ;;  %v988_v63 = vperm.slane %v982_v61, %v3444_v56 }
 0x184   : > { %v971_v1 = vrot.slane %v952_v59, 4  ;;  %v970_v2 = vsel %vm945_vm2, %v969_v53, %v952_v59  ;;  %v984_v3 = vsel %vm945_vm2, %v968_v38, %v983_v60 }
 0x185   : > { %v1218_v43 = vsub.f32 1.5, %v1217_v39  ;;  %v976_v4 = vperm.slane %v970_v2, %v3444_v56  ;;  %v992_v5 = vperm.slane %v984_v3, %v3444_v56  ;;  %v997_v6 = vrot.slane %v988_v63, 4  ;;  %v897_v3 = vld [vmem:[#allocation7] sm:$0xf] }
 0x186   : > { %v972_v8 = vsel %vm945_vm2, %v964_v42, %v971_v1  ;;  %2268 = vmatmul.msk.bf16.vlgmr.msrb.gmra.mxu1 %vm880_vm0, %v897_v3 }
 0x187   : > { %v1219_v48 = vmul.f32 %v2547_v30, %v1218_v43  ;;  %v980_v9 = vperm.slane %v972_v8, %v3444_v56  ;;  %v993_v10 = vrot.slane %v976_v4, 4  ;;  %v999_v12 = vrot.slane %v992_v5, 4 }
 0x188   : > { %v998_v15 = vsel %vm945_vm2, 0.0, %v997_v6 }
 0x189   : > { %v1223_v54 = vsel %vm1222_vm5, %v2547_v30, %v1219_v48  ;;  %v1000_v16 = vsel %vm945_vm2, 0.0, %v999_v12  ;;  %v1012_v17 = vsel %vm945_vm2, %v999_v12, %v988_v63  ;;  %v994_v20 = vsel %vm945_vm2, 0.0, %v993_v10  ;;  %v2537_v63 = vld [vmem:[#allocation12] ss:$0 sm:$0xff] }
 0x18a   : > { %v1224_v57 = vmul.f32 %v1223_v54, %v1207_v14  ;;  %v995_v14 = vrot.slane %v980_v9, 4  ;;  %v1016_v18 = vperm.slane %v1012_v17, %v3432_v34  ;;  %v1017_v19 = vrot.slane %v1000_v16, 4 }
 0x18c   : > { %v1228_v0 = vmul.f32 %v2535_v51, %v1224_v57  ;;  %v996_v21 = vsel %vm945_vm2, 0.0, %v995_v14  ;;  %v1001_v22 = vsel %vm945_vm2, %v995_v14, %v976_v4  ;;  %v1018_v25 = vsel %vm945_vm2, %v1017_v19, %v998_v15 }
 0x18d   : > { %v1005_v23 = vperm.slane %v1001_v22, %v3432_v34  ;;  %v1006_v24 = vrot.slane %v996_v21, 4  ;;  %v1037_v26 = vrot.slane %v1016_v18, 4  ;;  %v1022_v27 = vperm.slane %v1018_v25, %v3432_v34 }
 0x18e   : > { %v1232_v7 = vadd.f32 %v2536_v58, %v1228_v0 }
 0x18f   : > { %v1007_v28 = vsel %vm945_vm2, %v1006_v24, %v994_v20  ;;  %v1025_v29 = vrot.slane %v1005_v23, 4  ;;  %v1035_v31 = vrot.slane %v1022_v27, 4  ;;  %v1038_v32 = vsel %vm945_vm2, %v1022_v27, %v1037_v26 }
 0x190   : > { %v1233_v13 = vpack.c.bf16 %v1232_v7, %v1232_v7  ;;  %v1011_v30 = vperm.slane %v1007_v28, %v3432_v34  ;;  %v1046_v33 = vperm.slane %v1038_v32, %v3444_v56 }
 0x191   : > { %v1036_v37 = vsel %vm945_vm2, %v1035_v31, %v1016_v18 }
 0x192   : > { %2277 = vmatmul.msk.bf16.vlgmr.msra.gmra.mxu2 %vm880_vm0, %v1233_v13  ;;  %v1023_v35 = vrot.slane %v1011_v30, 4  ;;  %v1026_v36 = vsel %vm945_vm2, %v1011_v30, %v1025_v29  ;;  %v1042_v39 = vperm.slane %v1036_v37, %v3444_v56  ;;  %v1051_v40 = vrot.slane %v1046_v33, 4 }
 0x193   : > { %v1034_v38 = vperm.slane %v1026_v36, %v3444_v56 }
 0x194   : > { %v1024_v41 = vsel %vm945_vm2, %v1023_v35, %v1005_v23  ;;  %v1047_v43 = vrot.slane %v1042_v39, 4 }
 0x195   : > { %v1030_v42 = vperm.slane %v1024_v41, %v3444_v56  ;;  %v1052_v44 = vsel %vm945_vm2, %v1051_v40, %v1034_v38  ;;  %v1053_v45 = vrot.slane %v1034_v38, 4 }
 0x196   : > { %v1057_v46 = vpack.c.bf16 %v1052_v44, %v1052_v44 }
 0x197   : > { %v1048_v47 = vsel %vm945_vm2, %v1047_v43, %v1030_v42  ;;  %v1049_v48 = vrot.slane %v1030_v42, 4  ;;  %v1054_v49 = vsel %vm945_vm2, %v1046_v33, %v1053_v45 }
 0x198   : > { %v1055_v50 = vpack.c.bf16 %v1048_v47, %v1048_v47  ;;  %v1058_v51 = vpack.c.bf16 %v1054_v49, %v1054_v49  ;;  %1062 = vst.msk [vmem:[#allocation2 + $0x8] sm:$0xf] %vm1059_vm6, %v1057_v46 }
 0x199   : > { %v1050_v52 = vsel %vm945_vm2, %v1042_v39, %v1049_v48 }
 0x19a   : > { %v1056_v53 = vpack.c.bf16 %v1050_v52, %v1050_v52  ;;  %1060 = vst.msk [vmem:[#allocation2] sm:$0xf] %vm1059_vm6, %v1055_v50 }
 0x19b   : > { %1063 = vst.msk [vmem:[#allocation2 + $0xc] sm:$0xf] %vm1059_vm6, %v1058_v51 }
 0x19c   : > { %1061 = vst.msk [vmem:[#allocation2 + $0x4] sm:$0xf] %vm1059_vm6, %v1056_v53 }
 0x19f   : > { %v1397_v54 = vld [vmem:[#allocation2 + $0x8] sm:$0xf] }
 0x1a0   : > { %v1442_v55 = vsel %vm1399_vm7, %v1397_v54, 0 }
 0x1a1   : > { %v1395_v57 = vld [vmem:[#allocation2] sm:$0xf]  ;;  %1451 = vmatpush.bf16.xpose.msra.mxu1 %v1442_v55 }
 0x1a2   : > { %v1404_v58 = vsel %vm1399_vm7, %v1395_v57, 0  ;;  %v1398_v59 = vld [vmem:[#allocation2 + $0xc] sm:$0xf] }
 0x1a3   : > { %1413 = vmatpush.bf16.xpose.msra.mxu3 %v1404_v58  ;;  %v1396_v60 = vld [vmem:[#allocation2 + $0x4] sm:$0xf]  ;;  %v1461_v61 = vsel %vm1399_vm7, %v1398_v59, 0 }
 0x1a4   : > { %v1423_v62 = vsel %vm1399_vm7, %v1396_v60, 0  ;;  %1470 = vmatpush.bf16.xpose.msrb.mxu2 %v1461_v61 }
 0x1a5   : > { %1432 = vmatpush.bf16.xpose.msra.mxu0 %v1423_v62 }
 0x215   : > { %v1266_v0 = vpop.f32.mrf.mxu2 }
 0x216   : > { %v1267_v1 = vadd.f32 %v2537_v63, %v1266_v0 }
 0x218   : > { %1274 = vrot.lane.b32.xlu0 %v1267_v1, %s3092_s20  ;;  %1271 = vrot.lane.b32.xlu2 %v1267_v1, %s3090_s18  ;;  %v1283_v5 = vrot.slane %v1267_v1, 4 }
 0x219   : > { %1277 = vrot.lane.b32.xlu1 %v1267_v1, %s3091_s22 }
 0x21d   : > { %v1268_v2 = vpop.f32.mrf.mxu2 }
 0x272   : > { %v1272_v4 = vpop.permute.xlu2 %1271 }
 0x273   : > { %v1295_v6 = vrot.slane %v1272_v4, 4 }
 0x28a   : > { %v1275_v7 = vpop.permute.xlu0 %1274 }
 0x28b   : > { %v1280_v8 = vrot.slane %v1275_v7, 4  ;;  %v1284_v9 = vsel %vm945_vm2, %v1275_v7, %v1283_v5  ;;  %v1278_v10 = vpop.permute.xlu1 %1277 }
 0x28c   : > { %v1292_v12 = vperm.slane %v1284_v9, %v3432_v34  ;;  %v1293_v13 = vrot.slane %v1278_v10, 4  ;;  %v1296_v14 = vsel %vm945_vm2, %v1278_v10, %v1295_v6 }
 0x28d   : > { %v1282_v15 = vsel %vm945_vm2, %v1280_v8, %v1267_v1  ;;  %v1304_v16 = vperm.slane %v1296_v14, %v3432_v34 }
 0x28e   : > { %v1288_v17 = vperm.slane %v1282_v15, %v3432_v34  ;;  %v1319_v18 = vrot.slane %v1292_v12, 4  ;;  %v1294_v19 = vsel %vm945_vm2, %v1293_v13, %v1272_v4  ;;  %v930_v13 = vpop.f32.mrf.mxu1 }
 0x28f   : > { %v1300_v20 = vperm.slane %v1294_v19, %v3432_v34  ;;  %v1317_v21 = vrot.slane %v1304_v16, 4 }
 0x290   : > { %v1307_v22 = vrot.slane %v1288_v17, 4  ;;  %v1320_v23 = vsel %vm945_vm2, %v1304_v16, %v1319_v18 }
 0x291   : > { %v1305_v24 = vrot.slane %v1300_v20, 4  ;;  %v1318_v25 = vsel %vm945_vm2, %v1317_v21, %v1292_v12  ;;  %v1328_v26 = vperm.slane %v1320_v23, %v3444_v56 }
 0x292   : > { %v1308_v27 = vsel %vm945_vm2, %v1300_v20, %v1307_v22  ;;  %v1324_v28 = vperm.slane %v1318_v25, %v3444_v56 }
 0x293   : > { %v1306_v29 = vsel %vm945_vm2, %v1305_v24, %v1288_v17  ;;  %v1316_v30 = vperm.slane %v1308_v27, %v3444_v56  ;;  %v1335_v31 = vrot.slane %v1328_v26, 4  ;;  %v2538_v27 = vld [vmem:[#allocation15] ss:$0 sm:$0xff] }
 0x294   : > { %v1312_v32 = vperm.slane %v1306_v29, %v3444_v56  ;;  %v1333_v33 = vrot.slane %v1324_v28, 4 }
 0x295   : > { %v1331_v35 = vrot.slane %v1316_v30, 4  ;;  %v1336_v36 = vsel %vm945_vm2, 0.0, %v1335_v31  ;;  %v1348_v37 = vsel %vm945_vm2, %v1335_v31, %v1324_v28  ;;  %v931_v28 = vadd.f32 %v2538_v27, %v930_v13 }
 0x296   : > { %v1329_v38 = vrot.slane %v1312_v32, 4  ;;  %v1352_v39 = vperm.slane %v1348_v37, %v3432_v34  ;;  %v1353_v40 = vrot.slane %v1336_v36, 4  ;;  %v1334_v42 = vsel %vm945_vm2, 0.0, %v1333_v33  ;;  %v932_v14 = vpop.f32.mrf.mxu1 }
 0x297   : > { %v1332_v41 = vsel %vm945_vm2, 0.0, %v1331_v35  ;;  %v1337_v43 = vsel %vm945_vm2, %v1331_v35, %v1312_v32 }
 0x298   : > { %v1341_v44 = vperm.slane %v1337_v43, %v3432_v34  ;;  %v1342_v45 = vrot.slane %v1332_v41, 4  ;;  %v1354_v46 = vsel %vm945_vm2, %v1353_v40, %v1334_v42  ;;  %v1330_v47 = vsel %vm945_vm2, 0.0, %v1329_v38 }
 0x299   : > { %v1358_v48 = vperm.slane %v1354_v46, %v3432_v34  ;;  %v1373_v49 = vrot.slane %v1352_v39, 4 }
 0x29a   : > { %v1343_v50 = vsel %vm945_vm2, %v1342_v45, %v1330_v47  ;;  %v1361_v51 = vrot.slane %v1341_v44, 4 }
 0x29b   : > { %v1347_v52 = vperm.slane %v1343_v50, %v3432_v34  ;;  %v1374_v53 = vsel %vm945_vm2, %v1358_v48, %v1373_v49  ;;  %v1371_v54 = vrot.slane %v1358_v48, 4 }
 0x29c   : > { %v1382_v55 = vperm.slane %v1374_v53, %v3444_v56 }
 0x29d   : > { %v1362_v57 = vsel %vm945_vm2, %v1347_v52, %v1361_v51  ;;  %v1359_v58 = vrot.slane %v1347_v52, 4  ;;  %v1372_v59 = vsel %vm945_vm2, %v1371_v54, %v1352_v39 }
 0x29e   : > { %v1370_v60 = vperm.slane %v1362_v57, %v3444_v56  ;;  %v1387_v61 = vrot.slane %v1382_v55, 4  ;;  %v1378_v62 = vperm.slane %v1372_v59, %v3444_v56 }
 0x29f   : > { %v1360_v63 = vsel %vm945_vm2, %v1359_v58, %v1341_v44  ;;  %v1076_v58 = vrot.slane %v931_v28, 4 }
 0x2a0   : > { %v1388_v0 = vsel %vm945_vm2, %v1387_v61, %v1370_v60  ;;  %v1366_v1 = vperm.slane %v1360_v63, %v3444_v56  ;;  %v1383_v2 = vrot.slane %v1378_v62, 4  ;;  %v1389_v3 = vrot.slane %v1370_v60, 4 }
 0x2a1   : > { %v1393_v4 = vpack.c.bf16 %v1388_v0, %v1388_v0 }
 0x2a2   : > { %v1384_v5 = vsel %vm945_vm2, %v1383_v2, %v1366_v1  ;;  %v1390_v6 = vsel %vm945_vm2, %v1382_v55, %v1389_v3  ;;  %v1385_v7 = vrot.slane %v1366_v1, 4 }
 0x2a3   : > { %2280 = vmatmul.msk.bf16.vlgmr.msra.gmra.mxu1 %vm1399_vm7, %v1393_v4  ;;  %v1391_v8 = vpack.c.bf16 %v1384_v5, %v1384_v5  ;;  %v1394_v9 = vpack.c.bf16 %v1390_v6, %v1390_v6 }
 0x2a4   : > { %v1386_v10 = vsel %vm945_vm2, %v1378_v62, %v1385_v7 }
 0x2a5   : > { %2278 = vmatmul.msk.bf16.vlgmr.msra.gmra.mxu3 %vm1399_vm7, %v1391_v8  ;;  %2281 = vmatmul.msk.bf16.vlgmr.msrb.gmra.mxu2 %vm1399_vm7, %v1394_v9  ;;  %v1392_v12 = vpack.c.bf16 %v1386_v10, %v1386_v10 }
 0x2a7   : > { %2279 = vmatmul.msk.bf16.vlgmr.msra.gmra.mxu0 %vm1399_vm7, %v1392_v12 }
 0x320   : > { %v1453_v15 = vpop.f32.mrf.mxu1 }
 0x321   : > { %v1482_v16 = vsel %vm1399_vm7, %v1453_v15, -inf }
 0x322   : > { %1483 = vmax.xlane.f32.xlu2 %v1482_v16 }
 0x324   : > { %v1434_v17 = vpop.f32.mrf.mxu0 }
 0x325   : > { %v1479_v18 = vsel %vm1399_vm7, %v1434_v17, -inf }
 0x326   : > { %1480 = vmax.xlane.f32.xlu0 %v1479_v18 }
 0x328   : > { %v1415_v19 = vpop.f32.mrf.mxu3  ;;  %v1455_v20 = vpop.f32.mrf.mxu1 }
 0x329   : > { %v1472_v21 = vpop.f32.mrf.mxu2  ;;  %v1476_v22 = vsel %vm1399_vm7, %v1415_v19, -inf }
 0x32a   : > { %v1485_v23 = vsel %vm1399_vm7, %v1472_v21, -inf  ;;  %1477 = vmax.xlane.f32.xlu2 %v1476_v22 }
 0x32b   : > { %1486 = vmax.xlane.f32.xlu1 %v1485_v23 }
 0x32c   : > { %v1436_v24 = vpop.f32.mrf.mxu0 }
 0x330   : > { %v1417_v25 = vpop.f32.mrf.mxu3 }
 0x331   : > { %v1474_v26 = vpop.f32.mrf.mxu2 }
 0x33a   : > { %1071 = vrot.lane.b32.xlu0 %v931_v28, %s3091_s22 }
 0x342   : > { %1065 = vrot.lane.b32.xlu2 %v931_v28, %s3090_s18  ;;  %s3625_s18 = sand.u32 1, %s3830_s23  }
 0x343   : > { %s2249_s22 = sshll.u32 %s3625_s18, 2  ;;  %s1964_s11 = scalar_lea.sflag [#allocation26], %s3625_s18 }
 0x344   : > { %1068 = vrot.lane.b32.xlu1 %v931_v28, %s3092_s20  ;;  %s3630_s20 = scalar_lea.vmem [#allocation25], %s2249_s22 }
 0x345   : > { %s1992_s22 = sshll.u32 %s3630_s20, 4  ;;  %s1993_s22 = int_to_ptr.vmem [resolvable:$true] %s1992_s22 }
 0x395   : > { %v1484_v29 = vpop.xlane.xlu2 %1483 }
 0x396   : > { %v1490_v38 = vsub.f32 %v1453_v15, %v1484_v29 }
 0x398   : > { %v1496_v42 = vmul.f32 1.442695, %v1490_v38 }
 0x399   : > { %v1481_v30 = vpop.xlane.xlu0 %1480 }
 0x39a   : > { %v1489_v31 = vsub.f32 %v1434_v17, %v1481_v30 }
 0x39c   : > { %v1494_v32 = vmul.f32 1.442695, %v1489_v31 }
 0x39d   : > { %v1478_v33 = vpop.xlane.xlu2 %1477 }
 0x39e   : > { %2548 = vpow2.f32 %v1494_v32  ;;  %v1487_v35 = vpop.xlane.xlu1 %1486  ;;  %v1488_v36 = vsub.f32 %v1415_v19, %v1478_v33 }
 0x39f   : > { %v1491_v37 = vsub.f32 %v1472_v21, %v1487_v35 }
 0x3a0   : > { %v1492_v39 = vmul.f32 1.442695, %v1488_v36 }
 0x3a1   : > { %v1498_v40 = vmul.f32 1.442695, %v1491_v37 }
 0x3a2   : > { %2550 = vpow2.f32 %v1492_v39 }
 0x3a3   : > { %2552 = vpow2.f32 %v1498_v40 }
 0x3a4   : > { %v3546_v41 = vpop.eup %2548  ;;  %2554 = vpow2.f32 %v1496_v42 }
 0x3a5   : > { %v1503_v43 = vsel %vm1399_vm7, %v3546_v41, 0.0  ;;  %v1066_v48 = vpop.permute.xlu2 %1065 }
 0x3a6   : > { %1504 = vadd.xlane.f32.xlu0 %v1503_v43  ;;  %v1088_v51 = vrot.slane %v1066_v48, 4 }
 0x3a8   : > { %v3550_v44 = vpop.eup %2550 }
 0x3a9   : > { %v3552_v45 = vpop.eup %2552  ;;  %v1500_v46 = vsel %vm1399_vm7, %v3550_v44, 0.0 }
 0x3aa   : > { %v1509_v47 = vsel %vm1399_vm7, %v3552_v45, 0.0  ;;  %1501 = vadd.xlane.f32.xlu2 %v1500_v46  ;;  %v3558_v50 = vpop.eup %2554 }
 0x3ab   : > { %1510 = vadd.xlane.f32.xlu1 %v1509_v47  ;;  %v1506_v54 = vsel %vm1399_vm7, %v3558_v50, 0.0 }
 0x3ac   : > { %v1072_v49 = vpop.permute.xlu0 %1071 }
 0x3ad   : > { %v1086_v52 = vrot.slane %v1072_v49, 4  ;;  %v1089_v53 = vsel %vm945_vm2, %v1072_v49, %v1088_v51 }
 0x3ae   : > { %v1097_v57 = vperm.slane %v1089_v53, %v3432_v34 }
 0x3af   : > { %v1087_v55 = vsel %vm945_vm2, %v1086_v52, %v1066_v48 }
 0x3b0   : > { %v1093_v59 = vperm.slane %v1087_v55, %v3432_v34  ;;  %v1110_v63 = vrot.slane %v1097_v57, 4 }
 0x3b2   : > { %1507 = vadd.xlane.f32.xlu2 %v1506_v54  ;;  %v1098_v2 = vrot.slane %v1093_v59, 4 }
 0x3b6   : > { %v1069_v60 = vpop.permute.xlu1 %1068 }
 0x3b7   : > { %v1074_v61 = vrot.slane %v1069_v60, 4  ;;  %v1077_v62 = vsel %vm945_vm2, %v1069_v60, %v1076_v58 }
 0x3b8   : > { %v1085_v0 = vperm.slane %v1077_v62, %v3432_v34 }
 0x3b9   : > { %v1075_v1 = vsel %vm945_vm2, %v1074_v61, %v931_v28 }
 0x3ba   : > { %v1081_v3 = vperm.slane %v1075_v1, %v3432_v34  ;;  %v1111_v4 = vsel %vm945_vm2, %v1110_v63, %v1085_v0  ;;  %v1112_v5 = vrot.slane %v1085_v0, 4 }
 0x3bb   : > { %v1117_v6 = vperm.slane %v1111_v4, %v3444_v56 }
 0x3bc   : > { %v1099_v7 = vsel %vm945_vm2, %v1098_v2, %v1081_v3  ;;  %v1100_v8 = vrot.slane %v1081_v3, 4  ;;  %v1113_v9 = vsel %vm945_vm2, %v1097_v57, %v1112_v5 }
 0x3bd   : > { %v1105_v10 = vperm.slane %v1099_v7, %v3444_v56  ;;  %v1121_v12 = vperm.slane %v1113_v9, %v3444_v56  ;;  %v1126_v15 = vrot.slane %v1117_v6, 4 }
 0x3be   : > { %v1101_v13 = vsel %vm945_vm2, %v1093_v59, %v1100_v8 }
 0x3bf   : > { %v1109_v14 = vperm.slane %v1101_v13, %v3444_v56  ;;  %v1128_v16 = vrot.slane %v1121_v12, 4  ;;  %v1122_v17 = vrot.slane %v1105_v10, 4  ;;  %v1127_v24 = vsel %vm945_vm2, 0.0, %v1126_v15 }
 0x3c1   : > { %v1124_v18 = vrot.slane %v1109_v14, 4  ;;  %v1129_v19 = vsel %vm945_vm2, 0.0, %v1128_v16  ;;  %v1141_v20 = vsel %vm945_vm2, %v1128_v16, %v1117_v6  ;;  %v1123_v30 = vsel %vm945_vm2, 0.0, %v1122_v17  ;;  %v1672_v6 = vld [vmem:[%s3828_s1] sm:$0xf]  ;;  %s3833_s1 = sld [smem:[#allocation59_spill]] }
 0x3c2   : > { %v1145_v21 = vperm.slane %v1141_v20, %v3432_v34  ;;  %v1146_v22 = vrot.slane %v1129_v19, 4  ;;  %v1680_v7 = vsel %vm1594_vm8, %v1672_v6, 0 }
 0x3c3   : > { %v1125_v23 = vsel %vm945_vm2, 0.0, %v1124_v18  ;;  %v1130_v25 = vsel %vm945_vm2, %v1124_v18, %v1105_v10 }
 0x3c4   : > { %v1134_v26 = vperm.slane %v1130_v25, %v3432_v34  ;;  %v1135_v27 = vrot.slane %v1125_v23, 4  ;;  %v1147_v28 = vsel %vm945_vm2, %v1146_v22, %v1127_v24  ;;  %v1166_v29 = vrot.slane %v1145_v21, 4 }
 0x3c5   : > { %v1151_v31 = vperm.slane %v1147_v28, %v3432_v34 }
 0x3c6   : > { %v1136_v32 = vsel %vm945_vm2, %v1135_v27, %v1123_v30  ;;  %v1154_v33 = vrot.slane %v1134_v26, 4 }
 0x3c7   : > { %v1140_v35 = vperm.slane %v1136_v32, %v3432_v34  ;;  %v1164_v36 = vrot.slane %v1151_v31, 4  ;;  %v1167_v37 = vsel %vm945_vm2, %v1151_v31, %v1166_v29  ;;  %s3834_s5 = smov %s3833_s1  ;;  %s1990_s23 = scalar_lea.hbm %s3833_s1, %s3266_s19 }
 0x3c8   : > { %v1175_v38 = vperm.slane %v1167_v37, %v3444_v56  ;;  %s1994_s25 = sshll.u32 %s1990_s23, 4  ;;  %s2951_s2 = scalar_lea.hbm %s3834_s5, 8  ;;  %s1995_s25 = int_to_ptr.hbm [resolvable:$true] %s1994_s25 }
 0x3c9   : > { %v1152_v39 = vrot.slane %v1140_v35, 4  ;;  %v1155_v40 = vsel %vm945_vm2, %v1140_v35, %v1154_v33  ;;  %v1165_v42 = vsel %vm945_vm2, %v1164_v36, %v1145_v21  ;;  %s2945_s8 = sshra.s32 %s1995_s25, 4  ;;  %s2946_s8 = int_to_ptr.hbm [resolvable:$true] %s2945_s8 }
 0x3ca   : > { %v1163_v43 = vperm.slane %v1155_v40, %v3444_v56  ;;  %v1171_v46 = vperm.slane %v1165_v42, %v3444_v56  ;;  %v1180_v47 = vrot.slane %v1175_v38, 4  ;;  %s2947_s12 = scalar_lea.hbm %s2946_s8, 4  ;;  %p2952_p1 = scmp.lt.s32.totalorder %s2946_s8, %s3834_s5 }
 0x3cb   : > { %v1153_v48 = vsel %vm945_vm2, %v1152_v39, %v1134_v26  ;;  %p2948_p2 = scmp.ne.s32.totalorder %s2946_s8, %s2947_s12  ;;  %p2953_p5 = scmp.lt.s32.totalorder %s2951_s2, %s2947_s12 }
 0x3cc   : > { %v1159_v49 = vperm.slane %v1153_v48, %v3444_v56  ;;  %v1176_v34 = vrot.slane %v1171_v46, 4  ;;  %v1181_v51 = vsel %vm945_vm2, %v1180_v47, %v1163_v43  ;;  %v1182_v52 = vrot.slane %v1163_v43, 4 }
 0x3cd   : > { %v1186_v53 = vpack.c.bf16 %v1181_v51, %v1181_v51  ;;  %p2949_p12 = pnand %p2948_p2, %p3252_p8  ;;  %p2954_p9 = por %p2953_p5, %p2952_p1 }
 0x3ce   : > { %v1177_v54 = vsel %vm945_vm2, %v1176_v34, %v1159_v49  ;;  %v1178_v55 = vrot.slane %v1159_v49, 4  ;;  %v1183_v57 = vsel %vm945_vm2, %v1175_v38, %v1182_v52 }
 0x3cf   : > { %v1184_v58 = vpack.c.bf16 %v1177_v54, %v1177_v54  ;;  %v1187_v59 = vpack.c.bf16 %v1183_v57, %v1183_v57  ;;  %1190 = vst.msk [vmem:[#allocation3 + $0x8] sm:$0xf] %vm1059_vm6, %v1186_v53  ;;  %p2950_p0 = pneg %p2949_p12 }
 0x3d0   : > { %v1179_v60 = vsel %vm945_vm2, %v1171_v46, %v1178_v55 }
 0x3d1   : > { %v1185_v61 = vpack.c.bf16 %v1179_v60, %v1179_v60  ;;  %1188 = vst.msk [vmem:[#allocation3] sm:$0xf] %vm1059_vm6, %v1184_v58  ;;  %p2955_p3 = pnand %p2954_p9, %p2950_p0 }
 0x3d2   : > { %1191 = vst.msk [vmem:[#allocation3 + $0xc] sm:$0xf] %vm1059_vm6, %v1187_v59 }
 0x3d3   : > { %1189 = vst.msk [vmem:[#allocation3 + $0x4] sm:$0xf] %vm1059_vm6, %v1185_v61 }
 0x3d6   : > { %v1589_v56 = vld [vmem:[#allocation3 + $0x8] sm:$0xf] }
 0x3d7   : > { %v1634_v62 = vsel %vm1594_vm8, %v1589_v56, 0 }
 0x3d8   : > { %1643 = vmatpush.bf16.msrb.mxu1 %v1634_v62  ;;  %v1587_v63 = vld [vmem:[#allocation3] sm:$0xf] }
 0x3d9   : > { %v1596_v0 = vsel %vm1594_vm8, %v1587_v63, 0  ;;  %v1590_v1 = vld [vmem:[#allocation3 + $0xc] sm:$0xf] }
 0x3da   : > { %1605 = vmatpush.bf16.msrb.mxu3 %v1596_v0  ;;  %v1653_v2 = vsel %vm1594_vm8, %v1590_v1, 0  ;;  %v1588_v3 = vld [vmem:[#allocation3 + $0x4] sm:$0xf] }
 0x3db   : > { %1662 = vmatpush.bf16.msra.mxu2 %v1653_v2  ;;  %v1615_v4 = vsel %vm1594_vm8, %v1588_v3, 0 }
 0x3dc   : > { %1624 = vmatpush.bf16.msrb.mxu0 %v1615_v4 }
 0x3de   : > { %1689 = vmatpush.bf16.msra.mxu3 %v1680_v7  ;;  %v1675_v7 = vld [vmem:[%s3829_s4 + $0xc] sm:$0xf] }
 0x419   : > { %v1505_v5 = vpop.xlane.xlu0 %1504 }
 0x41a   : > { %2556 = vrcp.f32 %v1505_v5  ;;  %v1536_v14 = vand.u32 2147483647, %v1505_v5  ;;  %v1538_v16 = vand.u32 2147483648, %v1505_v5  ;;  %vm1532_vm10 = vweird.f32 %v1505_v5 }
 0x41c   : > { %vm1537_vm11 = vcmp.eq.f32.partialorder %v1536_v14, 8.507059e+37  ;;  %v1539_v24 = vor.u32 1.1754944e-38, %v1538_v16 }
 0x41d   : > { %v1502_v8 = vpop.xlane.xlu2 %1501 }
 0x41e   : > { %v1511_v9 = vpop.xlane.xlu1 %1510  ;;  %2558 = vrcp.f32 %v1502_v8  ;;  %v1521_v26 = vand.u32 2147483647, %v1502_v8  ;;  %v1523_v27 = vand.u32 2147483648, %v1502_v8  ;;  %vm1517_vm15 = vweird.f32 %v1502_v8 }
 0x41f   : > { %2560 = vrcp.f32 %v1511_v9  ;;  %v1568_v29 = vand.u32 2147483648, %v1511_v9  ;;  %v1566_v33 = vand.u32 2147483647, %v1511_v9  ;;  %vm1562_vm1 = vweird.f32 %v1511_v9 }
 0x420   : > { %v2557_v10 = vpop.eup %2556  ;;  %v1524_v39 = vor.u32 1.1754944e-38, %v1523_v27  ;;  %vm1522_vm4 = vcmp.eq.f32.partialorder %v1521_v26, 8.507059e+37 }
 0x421   : > { %v1528_v12 = vmul.f32 %v2557_v10, %v1505_v5  ;;  %vm1533_vm9 = vweird.f32 %v2557_v10  ;;  %v1569_v40 = vor.u32 1.1754944e-38, %v1568_v29  ;;  %vm1567_vm5 = vcmp.eq.f32.partialorder %v1566_v33, 8.507059e+37 }
 0x422   : > { %vm1534_vm12 = vmor %vm1532_vm10, %vm1533_vm9 }
 0x423   : > { %v1529_v13 = vsub.f32 1.0, %v1528_v12 }
 0x424   : > { %v2559_v15 = vpop.eup %2558 }
 0x425   : > { %v2561_v17 = vpop.eup %2560  ;;  %v1530_v18 = vmul.f32 %v2557_v10, %v1529_v13  ;;  %v1513_v19 = vmul.f32 %v2559_v15, %v1502_v8  ;;  %v1508_v20 = vpop.xlane.xlu2 %1507  ;;  %vm1518_vm13 = vweird.f32 %v2559_v15  ;;  %v1737_v8 = vsel %vm1594_vm8, %v1675_v7, 0 }
 0x426   : > { %v1558_v21 = vmul.f32 %v2561_v17, %v1511_v9  ;;  %2562 = vrcp.f32 %v1508_v20  ;;  %vm1563_vm14 = vweird.f32 %v2561_v17  ;;  %vm1519_vm2 = vmor %vm1517_vm15, %vm1518_vm13  ;;  %v1553_v52 = vand.u32 2147483648, %v1508_v20  ;;  %1746 = vmatpush.bf16.msrb.mxu2 %v1737_v8  ;;  %v1674_v9 = vld [vmem:[%s3829_s4 + $0x8] sm:$0xf] }
 0x427   : > { %v1531_v22 = vadd.f32 %v2557_v10, %v1530_v18  ;;  %v1514_v23 = vsub.f32 1.0, %v1513_v19  ;;  %vm1564_vm3 = vmor %vm1562_vm1, %vm1563_vm14  ;;  %v1551_v54 = vand.u32 2147483647, %v1508_v20  ;;  %vm1547_vm10 = vweird.f32 %v1508_v20  ;;  %v2350_v8 = vld [vmem:[%s3831_s27 + $0x28] sm:$0xff] }
 0x428   : > { %v1559_v25 = vsub.f32 1.0, %v1558_v21  ;;  %v1554_v59 = vor.u32 1.1754944e-38, %v1553_v52  ;;  %v2344_v52 = vld [vmem:[#allocation21 + $0x8] sm:$0xff] }
 0x429   : > { %v1535_v28 = vsel %vm1534_vm12, %v2557_v10, %v1531_v22  ;;  %v1515_v30 = vmul.f32 %v2559_v15, %v1514_v23  ;;  %vm1552_vm12 = vcmp.eq.f32.partialorder %v1551_v54, 8.507059e+37  ;;  %v1718_v10 = vsel %vm1594_vm8, %v1674_v9, 0 }
 0x42a   : > { %v1540_v31 = vsel %vm1537_vm11, %v1539_v24, %v1535_v28  ;;  %v1560_v32 = vmul.f32 %v2561_v17, %v1559_v25  ;;  %1727 = vmatpush.bf16.msra.mxu1 %v1718_v10 }
 0x42b   : > { %v1516_v35 = vadd.f32 %v2559_v15, %v1515_v30  ;;  %v1541_v36 = vmul.f32 %v3546_v41, %v1540_v31 }
 0x42c   : > { %v2563_v37 = vpop.eup %2562  ;;  %v1561_v38 = vadd.f32 %v2561_v17, %v1560_v32 }
 0x42d   : > { %v1520_v42 = vsel %vm1519_vm2, %v2559_v15, %v1516_v35  ;;  %v1543_v43 = vmul.f32 %v2563_v37, %v1508_v20  ;;  %v1584_v47 = vpack.c.bf16 %v1541_v36, %v1541_v36  ;;  %vm1548_vm9 = vweird.f32 %v2563_v37  ;;  %v2539_v35 = vld [vmem:[#allocation16] ss:$0 sm:$0xff] }
 0x42e   : > { %v1565_v46 = vsel %vm1564_vm3, %v2561_v17, %v1561_v38  ;;  %v1525_v48 = vsel %vm1522_vm4, %v1524_v39, %v1520_v42  ;;  %vm1549_vm11 = vmor %vm1547_vm10, %vm1548_vm9  ;;  %v1573_v56 = vsel %vm1399_vm7, %v1541_v36, 0.0 }
 0x42f   : > { %v1570_v49 = vsel %vm1567_vm5, %v1569_v40, %v1565_v46  ;;  %v1544_v34 = vsub.f32 1.0, %v1543_v43  ;;  %v1526_v51 = vmul.f32 %v3550_v44, %v1525_v48  ;;  %2283 = vmatmul.msk.bf16.vlgmr.msrb.gmra.mxu0 %vm1399_vm7, %v1584_v47  ;;  %v2570_v43 = vld [vmem:[%s3407_s9] sm:$0xff] }
 0x430   : > { %v1571_v41 = vmul.f32 %v3552_v45, %v1570_v49 }
 0x431   : > { %v1545_v53 = vmul.f32 %v2563_v37, %v1544_v34  ;;  %v1583_v55 = vpack.c.bf16 %v1526_v51, %v1526_v51  ;;  %v1572_v45 = vsel %vm1399_vm7, %v1526_v51, 0.0 }
 0x432   : > { %v1586_v57 = vpack.c.bf16 %v1571_v41, %v1571_v41  ;;  %v1574_v62 = vadd.f32 %v1573_v56, %v1572_v45  ;;  %v1577_v2 = vsel %vm1399_vm7, %v1571_v41, 0.0  ;;  %v2540_v56 = vld [vmem:[#allocation18] ss:$0 sm:$0xff] }
 0x433   : > { %v1546_v58 = vadd.f32 %v2563_v37, %v1545_v53  ;;  %2282 = vmatmul.msk.bf16.vlgmr.msrb.gmra.mxu3 %vm1399_vm7, %v1583_v55  ;;  %v2343_v53 = vld [vmem:[#allocation21] sm:$0xff] }
 0x434   : > { %2285 = vmatmul.msk.bf16.vlgmr.msra.gmra.mxu2 %vm1399_vm7, %v1586_v57  ;;  %1827 = vmatpush.bf16.msrb.mxu3 %v2344_v52 }
 0x435   : > { %v1550_v44 = vsel %vm1549_vm11, %v2563_v37, %v1546_v58 }
 0x436   : > { %v1555_v60 = vsel %vm1552_vm12, %v1554_v59, %v1550_v44 }
 0x437   : > { %v1556_v61 = vmul.f32 %v3558_v50, %v1555_v60  ;;  %v1673_v50 = vld [vmem:[%s3829_s4 + $0x4] sm:$0xf] }
 0x438   : > { %v1699_v6 = vsel %vm1594_vm8, %v1673_v50, 0  ;;  %1828 = vmatpush.bf16.msrb.mxu3 %v2343_v53  ;;  %v2351_v50 = vld [vmem:[%s3831_s27 + $0x30] sm:$0xff] }
 0x439   : > { %v1575_v63 = vsel %vm1399_vm7, %v1556_v61, 0.0  ;;  %v1585_v0 = vpack.c.bf16 %v1556_v61, %v1556_v61  ;;  %1708 = vmatpush.bf16.msra.mxu0 %v1699_v6 }
 0x43a   : > { %v1576_v1 = vadd.f32 %v1575_v63, %v1574_v62 }
 0x43b   : > { %2284 = vmatmul.msk.bf16.vlgmr.msrb.gmra.mxu1 %vm1399_vm7, %v1585_v0  ;;  %v2541_v0 = vld [vmem:[#allocation19] ss:$0 sm:$0xff] }
 0x43c   : > { %v1578_v3 = vadd.f32 %v1577_v2, %v1576_v1 }
 0x43e   : > { %v1579_v4 = vmul.f32 0.25, %v1578_v3 }
 0x440   : > { %v1580_v5 = vpack.c.bf16 %v1579_v4, %v1579_v4  ;;  %v2542_v4 = vld [vmem:[#allocation22] ss:$0 sm:$0xff] }
 0x442   : > { %1582 = vst.msk [vmem:[%s3630_s20] sm:$0xf] %vm1059_vm6, %v1580_v5 }
 0x4ac   : > { %v1626_v12 = vpop.f32.mrf.mxu0 }
 0x4ad   : > { %v1669_v13 = vpack.c.bf16 %v1626_v12, %v1626_v12 }
 0x4af   : > { %2287 = vmatmul.msk.bf16.vlgmr.msra.gmra.mxu0 %vm1399_vm7, %v1669_v13  ;;  %v2349_v13 = vld [vmem:[%s3831_s27 + $0x20] sm:$0xff] }
 0x4b4   : > { %v1628_v14 = vpop.f32.mrf.mxu0 }
 0x4b6   : > { %v1607_v15 = vpop.f32.mrf.mxu3 }
 0x4b7   : > { %v1668_v16 = vpack.c.bf16 %v1607_v15, %v1607_v15  ;;  %v1664_v17 = vpop.f32.mrf.mxu2  ;;  %v2348_v15 = vld [vmem:[%s3831_s27 + $0x18] sm:$0xff] }
 0x4b8   : > { %v1671_v18 = vpack.c.bf16 %v1664_v17, %v1664_v17  ;;  %v1645_v19 = vpop.f32.mrf.mxu1 }
 0x4b9   : > { %v1670_v20 = vpack.c.bf16 %v1645_v19, %v1645_v19  ;;  %2286 = vmatmul.msk.bf16.vlgmr.msra.gmra.mxu3 %vm1399_vm7, %v1668_v16  ;;  %v2347_v16 = vld [vmem:[%s3831_s27 + $0x10] sm:$0xff] }
 0x4ba   : > { %2289 = vmatmul.msk.bf16.vlgmr.msrb.gmra.mxu2 %vm1399_vm7, %v1671_v18 }
 0x4bb   : > { %2288 = vmatmul.msk.bf16.vlgmr.msra.gmra.mxu1 %vm1399_vm7, %v1670_v20  ;;  %v2346_v20 = vld [vmem:[%s3831_s27 + $0x8] sm:$0xff] }
 0x4be   : > { %v1609_v21 = vpop.f32.mrf.mxu3 }
 0x4bf   : > { %v1666_v22 = vpop.f32.mrf.mxu2 }
 0x4c0   : > { %v1647_v23 = vpop.f32.mrf.mxu1 }
 0x52c   : > { %v1710_v24 = vpop.f32.mrf.mxu0 }
 0x52d   : > { %v1753_v28 = vsel %vm880_vm0, %v1710_v24, 0.0 }
 0x534   : > { %v1712_v25 = vpop.f32.mrf.mxu0 }
 0x535   : > { %v2345_v25 = vld [vmem:[%s3831_s27] sm:$0xff] }
 0x538   : > { %v1729_v26 = vpop.f32.mrf.mxu1 }
 0x539   : > { %v1755_v32 = vsel %vm880_vm0, %v1729_v26, 0.0 }
 0x53c   : > { %v1691_v27 = vpop.f32.mrf.mxu3 }
 0x53d   : > { %v1752_v29 = vsel %vm880_vm0, %v1691_v27, 0.0  ;;  %v1748_v30 = vpop.f32.mrf.mxu2 }
 0x53e   : > { %v1754_v31 = vadd.f32 %v1753_v28, %v1752_v29  ;;  %v1757_v37 = vsel %vm880_vm0, %v1748_v30, 0.0 }
 0x540   : > { %v1756_v33 = vadd.f32 %v1755_v32, %v1754_v31  ;;  %v1731_v36 = vpop.f32.mrf.mxu1 }
 0x542   : > { %v1758_v38 = vadd.f32 %v1757_v37, %v1756_v33 }
 0x544   : > { %v1763_v39 = vadd.f32 %v2539_v35, %v1758_v38  ;;  %v1693_v40 = vpop.f32.mrf.mxu3 }
 0x545   : > { %v1750_v42 = vpop.f32.mrf.mxu2 }
 0x546   : > { %v3655_v46 = vadd.f32 %v2570_v43, %v1763_v39 }
 0x548   : > { %v1767_v47 = vsel %vm880_vm0, %v3655_v46, 0.0 }
 0x549   : > { %1768 = vadd.xlane.f32.xlu1 %v1767_v47 }
 0x5bc   : > { %v1769_v48 = vpop.xlane.xlu1 %1768 }
 0x5bd   : > { %v1770_v49 = vmul.f32 %v1769_v48, %v3418_v11 }
 0x5bf   : > { %v1771_v34 = vsub.f32 %v3655_v46, %v1770_v49 }
 0x5c1   : > { %v1772_v51 = vmul.f32 %v1771_v34, %v1771_v34 }
 0x5c3   : > { %v1773_v41 = vsel %vm880_vm0, %v1772_v51, 0.0 }
 0x5c4   : > { %1774 = vadd.xlane.f32.xlu2 %v1773_v41 }
 0x637   : > { %v1775_v54 = vpop.xlane.xlu2 %1774 }
 0x638   : > { %v1776_v55 = vmul.f32 %v1775_v54, %v3418_v11  ;;  %v2352_v11 = vld [vmem:[%s3831_s27 + $0x38] sm:$0xff] }
 0x639   : > { %1943 = vmatpush.bf16.msrb.mxu0 %v2352_v11 }
 0x63a   : > { %v1777_v57 = vadd.f32 1e-05, %v1776_v55 }
 0x63c   : > { %2564 = vrsqrt.f32 %v1777_v57  ;;  %vm1784_vm7 = vweird.f32 %v1777_v57 }
 0x63d   : > { %1944 = vmatpush.bf16.msrb.mxu0 %v2351_v50 }
 0x641   : > { %1945 = vmatpush.bf16.msrb.mxu0 %v2350_v8 }
 0x642   : > { %v2565_v58 = vpop.eup %2564 }
 0x643   : > { %v1779_v59 = vmul.f32 %v2565_v58, %v1777_v57  ;;  %vm1785_vm6 = vweird.f32 %v2565_v58 }
 0x644   : > { %vm1786_vm8 = vmor %vm1784_vm7, %vm1785_vm6 }
 0x645   : > { %v1780_v44 = vmul.f32 %v2565_v58, %v1779_v59  ;;  %1946 = vmatpush.bf16.msrb.mxu0 %v2349_v13 }
 0x647   : > { %v1781_v45 = vmul.f32 0.5, %v1780_v44 }
 0x649   : > { %v1782_v60 = vsub.f32 1.5, %v1781_v45  ;;  %1947 = vmatpush.bf16.msrb.mxu0 %v2348_v15 }
 0x64b   : > { %v1783_v61 = vmul.f32 %v2565_v58, %v1782_v60 }
 0x64d   : > { %v1787_v62 = vsel %vm1786_vm8, %v2565_v58, %v1783_v61  ;;  %1948 = vmatpush.bf16.msrb.mxu0 %v2347_v16 }
 0x64e   : > { %v1788_v63 = vmul.f32 %v1787_v62, %v1771_v34 }
 0x650   : > { %v1792_v1 = vmul.f32 %v2540_v56, %v1788_v63 }
 0x651   : > { %1949 = vmatpush.bf16.msrb.mxu0 %v2346_v20 }
 0x652   : > { %v1796_v2 = vadd.f32 %v2541_v0, %v1792_v1 }
 0x654   : > { %v1797_v3 = vpack.c.bf16 %v1796_v2, %v1796_v2 }
 0x655   : > { %1950 = vmatpush.bf16.msrb.mxu0 %v2345_v25 }
 0x656   : > { %2298 = vmatmul.msk.bf16.vlgmr.msrb.gmra.mxu3 %vm880_vm0, %v1797_v3 }
 0x6d9   : > { %v1830_v5 = vpop.f32.mrf.mxu3 }
 0x6da   : > { %v1831_v6 = vadd.f32 %v2542_v4, %v1830_v5 }
 0x6dc   : > { %v1834_v7 = vmul.f32 0.70710677, %v1831_v6  ;;  %v1871_v51 = vmul.f32 0.5, %v1831_v6 }
 0x6de   : > { %v1835_v9 = vand.u32 2147483647, %v1834_v7  ;;  %vm1868_vm2 = vcmp.ge.f32.partialorder %v1834_v7, 0.0 }
 0x6e0   : > { %v1836_v10 = vmul.f32 0.3275911, %v1835_v9  ;;  %v1862_v29 = vsub.f32 0.0, %v1835_v9 }
 0x6e1   : > { %v1832_v12 = vpop.f32.mrf.mxu3 }
 0x6e2   : > { %v1837_v14 = vadd.f32 1.0, %v1836_v10  ;;  %v1863_v32 = vmul.f32 %v1862_v29, %v1835_v9 }
 0x6e4   : > { %2566 = vrcp.f32 %v1837_v14  ;;  %v1849_v21 = vand.u32 2147483648, %v1837_v14  ;;  %v1847_v23 = vand.u32 2147483647, %v1837_v14  ;;  %vm1843_vm14 = vweird.f32 %v1837_v14 }
 0x6e5   : > { %v1864_v36 = vmul.f32 1.442695, %v1863_v32 }
 0x6e6   : > { %v1850_v26 = vor.u32 1.1754944e-38, %v1849_v21  ;;  %vm1848_vm1 = vcmp.eq.f32.partialorder %v1847_v23, 8.507059e+37 }
 0x6e7   : > { %2568 = vpow2.f32 %v1864_v36 }
 0x6ea   : > { %v2567_v17 = vpop.eup %2566 }
 0x6eb   : > { %v1839_v18 = vmul.f32 %v2567_v17, %v1837_v14  ;;  %vm1844_vm13 = vweird.f32 %v2567_v17 }
 0x6ec   : > { %vm1845_vm15 = vmor %vm1843_vm14, %vm1844_vm13 }
 0x6ed   : > { %v1840_v19 = vsub.f32 1.0, %v1839_v18  ;;  %v2569_v43 = vpop.eup %2568 }
 0x6ef   : > { %v1841_v22 = vmul.f32 %v2567_v17, %v1840_v19 }
 0x6f1   : > { %v1842_v24 = vadd.f32 %v2567_v17, %v1841_v22 }
 0x6f3   : > { %v1846_v27 = vsel %vm1845_vm15, %v2567_v17, %v1842_v24 }
 0x6f4   : > { %v1851_v28 = vsel %vm1848_vm1, %v1850_v26, %v1846_v27 }
 0x6f5   : > { %v1853_v30 = vmul.f32 1.0614054, %v1851_v28 }
 0x6f7   : > { %v1854_v31 = vadd.f32 -1.4531521, %v1853_v30 }
 0x6f9   : > { %v1855_v33 = vmul.f32 %v1854_v31, %v1851_v28 }
 0x6fb   : > { %v1856_v35 = vadd.f32 1.4214138, %v1855_v33 }
 0x6fd   : > { %v1857_v37 = vmul.f32 %v1856_v35, %v1851_v28 }
 0x6ff   : > { %v1858_v38 = vadd.f32 -0.28449672, %v1857_v37 }
 0x701   : > { %v1859_v39 = vmul.f32 %v1858_v38, %v1851_v28 }
 0x703   : > { %v1860_v40 = vadd.f32 0.2548296, %v1859_v39 }
 0x705   : > { %v1861_v42 = vmul.f32 %v1860_v40, %v1851_v28 }
 0x707   : > { %v1866_v47 = vmul.f32 %v2569_v43, %v1861_v42 }
 0x709   : > { %v1867_v48 = vsub.f32 1.0, %v1866_v47 }
 0x70b   : > { %v1869_v49 = vsub.f32 0.0, %v1867_v48 }
 0x70d   : > { %v1870_v34 = vsel %vm1868_vm2, %v1867_v48, %v1869_v49 }
 0x70e   : > { %v1872_v41 = vadd.f32 1.0, %v1870_v34 }
 0x710   : > { %v1873_v52 = vmul.f32 %v1872_v41, %v1871_v51 }
 0x712   : > { %v1874_v53 = vpack.c.bf16 %v1873_v52, %v1873_v52 }
 0x714   : > { %1951 = vmatmul.bf16.vlgmr.msrb.gmra.mxu0 %v1874_v53 }
 0x715   : > { %2958 = shalt.err (!%p2955_p3)
}
 0x716   : > { %2398 = dma.vmem_to_hbm [thread:$0]  (%p3252_p8), %s1993_s22, 64, %s1995_s25, %s1964_s11  }
 0x717   : > { %s2248_s19 = sshll.u32 %s3625_s18, 3  ;;  %s2333_s20 = sshll.u32 %s3065_s24, 3 }
 0x718   : > { %s3835_s1 = sld [smem:[#allocation57_spill]]  ;;  %s839_s8 = scalar_lea.vmem [#allocation24], %s2248_s19 }
 0x719   : > { %s3836_s3 = sld [smem:[#allocation58_spill]]  ;;  %s1977_s12 = sshll.u32 %s839_s8, 4  ;;  %s1978_s12 = int_to_ptr.vmem [resolvable:$true] %s1977_s12 }
 0x71a   : > { %s1959_s24 = scalar_lea.sflag [#allocation6], %s3625_s18 }
 0x71e   : > { %v2543_v54 = vld [vmem:[%s3835_s1] ss:$0 sm:$0xff] }
 0x71f   : > { %s1975_s4 = scalar_lea.hbm %s3836_s3, %s2333_s20  ;;  %s2979_s19 = scalar_lea.hbm %s3836_s3, 16 }
 0x720   : > { %s1979_s9 = sshll.u32 %s1975_s4, 4  ;;  %s1980_s9 = int_to_ptr.hbm [resolvable:$true] %s1979_s9 }
 0x721   : > { %s2973_s22 = sshra.s32 %s1980_s9, 4  ;;  %s2974_s22 = int_to_ptr.hbm [resolvable:$true] %s2973_s22 }
 0x722   : > { %s2975_s25 = scalar_lea.hbm %s2974_s22, 8  ;;  %p2980_p11 = scmp.lt.s32.totalorder %s2974_s22, %s3836_s3 }
 0x723   : > { %p2976_p6 = scmp.ne.s32.totalorder %s2974_s22, %s2975_s25  ;;  %p2981_p13 = scmp.lt.s32.totalorder %s2979_s19, %s2975_s25 }
 0x725   : > { %p2977_p7 = pnand %p2976_p6, %p3252_p8  ;;  %p2982_p4 = por %p2981_p13, %p2980_p11 }
 0x727   : > { %p2978_p10 = pneg %p2977_p7 }
 0x729   : > { %p2983_p2 = pnand %p2982_p4, %p2978_p10 }
 0x791   : > { %v1952_v55 = vpop.f32.mrf.mxu0 }
 0x792   : > { %v1953_v57 = vadd.f32 %v2543_v54, %v1952_v55 }
 0x794   : > { %v1956_v58 = vadd.f32 %v1953_v57, %v3655_v46 }
 0x796   : > { %1957 = vst.msk [vmem:[%s839_s8] sm:$0xff] %vm880_vm0, %v1956_v58 }
 0x797   : > { %2986 = shalt.err (!%p2983_p2)
}
 0x798   : > { %2397 = dma.vmem_to_hbm [thread:$0]  (%p3252_p8), %s1978_s12, 128, %s1980_s9, %s1959_s24  }
 0x799   : > { %v1954_v46 = vpop.f32.mrf.mxu0 }
 0x79a PF: > { %s3837_s18 = sld [smem:[#allocation41_spill]] }
 0x79b   : > { %s3838_s26 = sld [smem:[#allocation37_spill]] }
 0x79c   : > { %s3839_s1 = sld [smem:[#allocation44_spill]] }
 0x7a0   : > { %p2465_p12 = scmp.ge.s32.totalorder %s3837_s18, 2 }
 0x7a1   : > { %s2006_s23 = sand.u32 1, %s3838_s26  }
 0x7a2   : > { %p3840_p0 = scmp.ne.s32.totalorder %s3839_s1, 0  ;;  %s2007_s21 = scalar_lea.sflag [#allocation6], %s2006_s23 }
 0x7a4   : > { %p2439_p1 = pnand %p2465_p12, %p3840_p0 }
 0x7a6   : > { %p2440_p5 = pneg %p2439_p1 }
 0x7a8   : > { %3044 = dma.done.wait (%p2440_p5), %s2007_s21, 128  }
 0x7a9   : > { %3046 = vsyncadd (%p2440_p5), %s2007_s21, 4294967168  ;;  %s2017_s4 = scalar_lea.sflag [#allocation26], %s2006_s23 }
 0x7aa   : > { %3048 = dma.done.wait (%p2440_p5), %s2017_s4, 64  }
 0x7ab   : > { %3050 = vsyncadd (%p2440_p5), %s2017_s4, 4294967232  ;;  %s44_s25 = sadd.s32 1, %s3837_s18   ;;  %s3841_s1 = sld [smem:[#allocation38_spill]] }
 0x7ac   : > { %p41_p9 = scmp.ge.s32.totalorder %s44_s25, 4   ;;  %s3842_s22 = sld [smem:[#allocation39_spill]] }
 0x7ad   : > { %s3843_s23 = sld [smem:[#allocation45_spill]] }
 0x7ae   : > { %s3844_s24 = sld [smem:[#allocation40_spill]]  ;;  %43 = sbr.rel (!%p41_p9) target bundleno = 28 (0x1c), region = 203 }
 0x7af   : > { %s3845_s2 = sld [smem:[#allocation42_spill]] }
 0x7b3   :  { %2023 = vsyncpa [#allocation5], 1 }
 0x7b4   :  { %2025 = vsyncpa [#allocation5 + $0x1], 1 }
 0x7b5   :  { %2026 = vsyncpa [#allocation8], 1 }
 0x7b6   :  { %2027 = vsyncpa [#allocation11], 1 }
 0x7b7   :  { %2028 = vsyncpa [#allocation14], 1 }
 0x7b8   :  { %2029 = vsyncpa [#allocation17], 1 }
 0x7b9   :  { %2030 = vsyncpa [#allocation20], 1 }
 0x7ba   :  { %2031 = vsyncpa [#allocation23], 1 }
 0x7bb   :  { %2032 = vsyncpa [#allocation6], 1 }
 0x7bc   :  { %2034 = vsyncpa [#allocation6 + $0x1], 1 }
 0x7bd   :  { %2035 = vsyncpa [#allocation26], 1 }
 0x7be   :  { %2037 = vsyncpa [#allocation26 + $0x1], 1 }

</bundles_post_ra>
